<compile_context>
chip_gen: v6e
topology: v6e:2x2x1
jax: 0.10.0
libtpu: 0.0.40
codegen_flags: <defaults>
</compile_context>

<pallas_src>
import functools

import jax
import jax.numpy as jnp
import numpy as np
from jax import lax
from jax.experimental import pallas as pl
from jax.experimental.pallas import tpu as pltpu


def _residual_block_kernel(xpad_ref, w1_ref, b1_ref, w2_ref, b2_ref, o_ref,
                           s_ref, p2_ref, *, C, H, W, eps, rows_per_tile):
    """One batch element per grid step.

    xpad_ref : (C, (H+3)*(W+2)) f32  reflection-padded input, spatially flattened
                                     row-major, plus one zero row (tap overhang).
    w*_ref   : (9, C, C) bf16        per-tap (C_out, C_in) conv weights, k = dy*3+dx.
    b*_ref   : (C, 1) f32            conv biases.
    o_ref    : (C, H*(W+2)) f32      wide output (junk columns sliced off in wrapper).
    s_ref    : (C, H*(W+2)) f32      VMEM scratch: masked conv output (reused by both convs).
    p2_ref   : (C, (H+3)*(W+2)) f32  VMEM scratch: padded slab for the second conv.
    """
    WP = W + 2                       # padded row width
    NW = H * WP                      # wide output grid size
    NPAD = (H + 2) * WP              # proper padded grid size
    OFF0 = WP + 1                    # flat offset of image pixel (0, 0) in padded grid
    inv_n = 1.0 / float(H * W)

    # Column masks of the wide H x (W+2) grid, built in-kernel (no mask input).
    col = lax.broadcasted_iota(jnp.int32, (1, NW), 1) % WP
    valid = (col < W).astype(jnp.float32)       # 1.0 on real pixels, 0.0 on junk cols
    right_junk = col == W                       # lands on right border of padded row r+1
    left_junk = col == W + 1                    # lands on left border of padded row r+2

    def conv3x3(src_ref, w_ref, b_ref):
        """Lane-tiled 3x3 conv: 9 bf16 (C,C)@(C,tile) MXU matmuls, f32 accumulation.

        Stores the biased, junk-masked result into s_ref once per tile and folds
        the instance-norm statistics into the same pass.  Returns (sum, sum_sq).
        """
        ssum = jnp.zeros((C, 1), jnp.float32)
        ssq = jnp.zeros((C, 1), jnp.float32)
        r0 = 0
        while r0 < H:
            rt = min(rows_per_tile, H - r0)
            tw = rt * WP
            lo = r0 * WP
            acc = jnp.zeros((C, tw), jnp.float32)
            for dy in range(3):
                base = (r0 + dy) * WP
                # One load + one bf16 cast per (tile, dy); dx taps are lane-slices.
                row = src_ref[:, base:base + tw + 2].astype(jnp.bfloat16)
                for dx in range(3):
                    acc = acc + jnp.dot(w_ref[dy * 3 + dx], row[:, dx:dx + tw],
                                        preferred_element_type=jnp.float32)
            acc = (acc + b_ref[...]) * valid[:, lo:lo + tw]     # bias + zero junk cols
            s_ref[:, lo:lo + tw] = acc                          # single store per tile
            ssum = ssum + jnp.sum(acc, axis=1, keepdims=True)
            ssq = ssq + jnp.sum(acc * acc, axis=1, keepdims=True)
            r0 += rt
        return ssum, ssq

    def norm_scale(ssum, ssq):
        # InstanceNorm2d defaults: affine=False, biased variance, eps inside rsqrt.
        m = ssum * inv_n
        var = jnp.maximum(ssq * inv_n - m * m, 0.0)
        return m, lax.rsqrt(var + eps)

    # ---- conv1 (+bias) -> masked slab + fused stats ---------------------------
    s1_sum, s1_sq = conv3x3(xpad_ref, w1_ref, b1_ref)
    m1, sc1 = norm_scale(s1_sum, s1_sq)

    # ---- instance-norm + ReLU + reflection-pad into p2 (vectorised) ----------
    h1 = jnp.maximum((s_ref[...] - m1) * sc1, 0.0)                     # (C, NW)
    # In the wide layout the junk column at p=W of row r lands on the RIGHT
    # border of padded row r+1, and the junk at p=W+1 lands on the LEFT border
    # of padded row r+2; replacing them with values rolled by +/-2 lanes writes
    # the reflection borders as part of the bulk interior store (no per-row
    # scalar fix-up loop).  Roll wrap-around only touches positions that the
    # bottom border-row copy overwrites.
    interior = jnp.where(right_junk, jnp.roll(h1, 2, axis=1),
                         jnp.where(left_junk, jnp.roll(h1, -2, axis=1), h1))
    p2_ref[:, OFF0:OFF0 + NW] = interior
    p2_ref[:, WP:WP + 1] = h1[:, 1:2]                          # left border of padded row 1
    p2_ref[:, NPAD:NPAD + WP] = jnp.zeros((C, WP), jnp.float32)  # tap-overhang row
    p2_ref[:, 0:WP] = p2_ref[:, 2 * WP:3 * WP]                   # top border row
    p2_ref[:, (H + 1) * WP:NPAD] = p2_ref[:, (H - 1) * WP:H * WP]  # bottom border row

    # ---- conv2 (+bias) -> masked slab + fused stats (reuses s_ref) -----------
    s2_sum, s2_sq = conv3x3(p2_ref, w2_ref, b2_ref)
    m2, sc2 = norm_scale(s2_sum, s2_sq)

    # ---- instance-norm + residual add (f32 identity path) --------------------
    x_wide = xpad_ref[:, OFF0:OFF0 + NW]                        # original x (f32)
    o_ref[...] = (x_wide + (s_ref[...] - m2) * sc2).astype(o_ref.dtype)


def residual_block(x, w1, b1, w2, b2, *, eps=1e-5):
    """x: (B, C, H, W) f32; w*: (C, C, 3, 3) OIHW; b*: (C,). Returns (B, C, H, W)."""
    B, C, H, W = x.shape
    assert H >= 2 and W >= 2, "reflection padding needs spatial dims >= 2"
    WP, NW, PADN = W + 2, H * (W + 2), (H + 3) * (W + 2)

    # Reflection-pad the input once in the wrapper (pure layout), flatten the
    # spatial dims row-major, append one zero row for the tap overhang.
    xpad = jnp.pad(x, ((0, 0), (0, 0), (1, 1), (1, 1)), mode="reflect")
    xpad = jnp.pad(xpad, ((0, 0), (0, 0), (0, 1), (0, 0)))
    xpad = xpad.reshape(B, C, PADN).astype(jnp.float32)

    # Per-tap (C_out, C_in) weight matrices (k = dy*3 + dx), bf16 for single-pass MXU.
    def prep_w(w):
        return jnp.transpose(w, (2, 3, 0, 1)).reshape(9, C, C).astype(jnp.bfloat16)
    w1_r, w2_r = prep_w(w1), prep_w(w2)
    b1_r = b1.reshape(C, 1).astype(jnp.float32)
    b2_r = b2.reshape(C, 1).astype(jnp.float32)

    # Row-aligned lane tiles of ~512 lanes for the conv accumulator.
    rows_per_tile = max(1, min(H, 512 // WP))

    # VMEM budget from actual block sizes (double-buffered ins/outs + scratch),
    # with 2x headroom for in-kernel temporaries; clamp to [32 MiB, 100 MiB].
    est = (2 * C * PADN * 4 + 2 * C * NW * 4          # xpad / out blocks (double-buffered)
           + 2 * (2 * 9 * C * C * 2 + 2 * C * 4)      # bf16 weights + f32 biases
           + C * NW * 4 + C * PADN * 4)               # s / p2 scratch
    vmem_limit = int(min(100 * 1024 * 1024, max(32 * 1024 * 1024, 2 * est)))

    kernel = functools.partial(_residual_block_kernel, C=C, H=H, W=W, eps=eps,
                               rows_per_tile=rows_per_tile)
    out_wide = pl.pallas_call(
        kernel,
        out_shape=jax.ShapeDtypeStruct((B, C, NW), jnp.float32),
        grid_spec=pltpu.PrefetchScalarGridSpec(
            num_scalar_prefetch=0,
            grid=(B,),
            in_specs=[
                pl.BlockSpec((None, C, PADN), lambda b: (b, 0, 0)),   # xpad (f32)
                pl.BlockSpec((9, C, C), lambda b: (0, 0, 0)),         # w1 (bf16), grid-invariant
                pl.BlockSpec((C, 1), lambda b: (0, 0)),               # b1
                pl.BlockSpec((9, C, C), lambda b: (0, 0, 0)),         # w2 (bf16), grid-invariant
                pl.BlockSpec((C, 1), lambda b: (0, 0)),               # b2
            ],
            out_specs=pl.BlockSpec((None, C, NW), lambda b: (b, 0, 0)),
            scratch_shapes=[pltpu.VMEM((C, NW), jnp.float32),
                            pltpu.VMEM((C, PADN), jnp.float32)],
        ),
        compiler_params=pltpu.CompilerParams(
            dimension_semantics=("parallel",),
            vmem_limit_bytes=vmem_limit,
        ),
    )(xpad, w1_r, b1_r, w2_r, b2_r)

    # Drop the two junk columns per row (wrapper-side layout plumbing only).
    return out_wide.reshape(B, C, H, WP)[..., :W]


def _reference(x, w1, b1, w2, b2, eps=1e-5):
    # Pure-JAX f32 reference mirroring the PyTorch ResidualBlock.
    def pad(v):
        return jnp.pad(v, ((0, 0), (0, 0), (1, 1), (1, 1)), mode="reflect")

    def conv(v, w, b):
        y = lax.conv_general_dilated(
            v, w, window_strides=(1, 1), padding="VALID",
            dimension_numbers=("NCHW", "OIHW", "NCHW"),
            precision=lax.Precision.HIGHEST)
        return y + b[None, :, None, None]

    def inorm(v):
        m = v.mean(axis=(2, 3), keepdims=True)
        var = ((v - m) ** 2).mean(axis=(2, 3), keepdims=True)
        return (v - m) / jnp.sqrt(var + eps)

    y = jnp.maximum(inorm(conv(pad(x), w1, b1)), 0.0)
    return x + inorm(conv(pad(y), w2, b2))


if __name__ == "__main__":
    B, C, H, W = 2, 4, 16, 16

    key = jax.random.PRNGKey(0)
    kx, kw1, kb1, kw2, kb2 = jax.random.split(key, 5)

    # Deterministic synthetic parameters (Conv2d-like uniform init, fan_in = C*9).
    bound = 1.0 / np.sqrt(C * 3 * 3)
    x = jax.random.normal(kx, (B, C, H, W), dtype=jnp.float32)
    w1 = jax.random.uniform(kw1, (C, C, 3, 3), jnp.float32, -bound, bound)
    b1 = jax.random.uniform(kb1, (C,), jnp.float32, -bound, bound)
    w2 = jax.random.uniform(kw2, (C, C, 3, 3), jnp.float32, -bound, bound)
    b2 = jax.random.uniform(kb2, (C,), jnp.float32, -bound, bound)

    out = jax.block_until_ready(residual_block(x, w1, b1, w2, b2))
    ref = jax.block_until_ready(_reference(x, w1, b1, w2, b2))

    assert out.shape == (B, C, H, W)
    # Tolerance accounts for bf16 MXU operands (f32 accumulation) vs the f32
    # HIGHEST-precision reference, compounded over two convs + two norms.
    np.testing.assert_allclose(np.asarray(out), np.asarray(ref),
                               rtol=2e-2, atol=2e-2)

    print("KERNEL_OK")
</pallas_src>

<mosaic_0001>
module attributes {stable_mosaic.version = 11 : i64} {
  func.func @_residual_block_kernel(%arg0: i32, %arg1: memref<1x4x342xf32, #tpu.memory_space<vmem>>, %arg2: memref<9x4x4xbf16, #tpu.memory_space<vmem>>, %arg3: memref<4x1xf32, #tpu.memory_space<vmem>>, %arg4: memref<9x4x4xbf16, #tpu.memory_space<vmem>>, %arg5: memref<4x1xf32, #tpu.memory_space<vmem>>, %arg6: memref<1x4x288xf32, #tpu.memory_space<vmem>>, %arg7: memref<4x288xf32, #tpu.memory_space<vmem>>, %arg8: memref<4x342xf32, #tpu.memory_space<vmem>>) attributes {dimension_semantics = [#tpu.dimension_semantics<parallel>], iteration_bounds = array<i64: 2>, scalar_prefetch = 0 : i64, scratch_operands = 2 : i64, tpu.core_type = #tpu.core_type<tc>, window_params = [{transform_indices = @transform_0, window_bounds = array<i64: 1, 4, 342>}, {pipeline_mode = #tpu.pipeline_mode<synchronous>, transform_indices = @transform_1, window_bounds = array<i64: 9, 4, 4>}, {pipeline_mode = #tpu.pipeline_mode<synchronous>, transform_indices = @transform_2, window_bounds = array<i64: 4, 1>}, {pipeline_mode = #tpu.pipeline_mode<synchronous>, transform_indices = @transform_3, window_bounds = array<i64: 9, 4, 4>}, {pipeline_mode = #tpu.pipeline_mode<synchronous>, transform_indices = @transform_4, window_bounds = array<i64: 4, 1>}, {transform_indices = @transform_5, window_bounds = array<i64: 1, 4, 288>}]} {
    %0 = tpu.iota {dimensions = array<i32: 1>} : vector<1x288xi32>
    %c18_i32 = arith.constant 18 : i32
    %c0_i32 = arith.constant 0 : i32
    %1 = arith.cmpi eq, %c18_i32, %c0_i32 : i32
    %c1_i32 = arith.constant 1 : i32
    %2 = arith.select %1, %c1_i32, %c18_i32 : i32
    %3 = vector.broadcast %2 : i32 to vector<1x288xi32>
    %4 = arith.remsi %0, %3 : vector<1x288xi32>
    %c0_i32_0 = arith.constant 0 : i32
    %5 = vector.broadcast %c0_i32_0 : i32 to vector<1x288xi32>
    %6 = arith.cmpi ne, %4, %5 : vector<1x288xi32>
    %c0_i32_1 = arith.constant 0 : i32
    %7 = vector.broadcast %c0_i32_1 : i32 to vector<1x288xi32>
    %8 = arith.cmpi slt, %4, %7 : vector<1x288xi32>
    %c0_i32_2 = arith.constant 0 : i32
    %9 = arith.cmpi slt, %2, %c0_i32_2 : i32
    %10 = vector.broadcast %9 : i1 to vector<1x288xi1>
    %11 = vector.broadcast %10 : vector<1x288xi1> to vector<1x288xi1>
    %12 = arith.xori %8, %11 : vector<1x288xi1>
    %13 = arith.andi %12, %6 : vector<1x288xi1>
    %14 = vector.broadcast %2 : i32 to vector<1x288xi32>
    %15 = arith.addi %4, %14 : vector<1x288xi32>
    %16 = arith.select %13, %15, %4 : vector<1x288xi1>, vector<1x288xi32>
    %c16_i32 = arith.constant 16 : i32
    %17 = vector.broadcast %c16_i32 : i32 to vector<1x288xi32>
    %18 = arith.cmpi slt, %16, %17 : vector<1x288xi32>
    %19 = arith.extui %18 : vector<1x288xi1> to vector<1x288xi32>
    %20 = arith.sitofp %19 : vector<1x288xi32> to vector<1x288xf32>
    %c16_i32_3 = arith.constant 16 : i32
    %21 = vector.broadcast %c16_i32_3 : i32 to vector<1x288xi32>
    %22 = arith.cmpi eq, %16, %21 : vector<1x288xi32>
    %c17_i32 = arith.constant 17 : i32
    %23 = vector.broadcast %c17_i32 : i32 to vector<1x288xi32>
    %24 = arith.cmpi eq, %16, %23 : vector<1x288xi32>
    %cst = arith.constant 0.000000e+00 : f32
    %25 = vector.broadcast %cst : f32 to vector<4x1xf32>
    %cst_4 = arith.constant 0.000000e+00 : f32
    %26 = vector.broadcast %cst_4 : f32 to vector<4x1xf32>
    %cst_5 = arith.constant 0.000000e+00 : f32
    %27 = vector.broadcast %cst_5 : f32 to vector<4x288xf32>
    %c0 = arith.constant 0 : index
    %c0_6 = arith.constant 0 : index
    %c0_7 = arith.constant 0 : index
    %28 = vector.load %arg1[%c0, %c0_6, %c0_7] : memref<1x4x342xf32, #tpu.memory_space<vmem>>, vector<1x4x290xf32>
    %29 = vector.shape_cast %28 : vector<1x4x290xf32> to vector<4x290xf32>
    %30 = arith.truncf %29 : vector<4x290xf32> to vector<4x290xbf16>
    %c0_8 = arith.constant 0 : index
    %c0_9 = arith.constant 0 : index
    %c0_10 = arith.constant 0 : index
    %31 = vector.load %arg2[%c0_8, %c0_9, %c0_10] : memref<9x4x4xbf16, #tpu.memory_space<vmem>>, vector<1x4x4xbf16>
    %32 = vector.shape_cast %31 : vector<1x4x4xbf16> to vector<4x4xbf16>
    %33 = vector.extract_strided_slice %30 {offsets = [0, 0], sizes = [4, 288], strides = [1, 1]} : vector<4x290xbf16> to vector<4x288xbf16>
    %cst_11 = arith.constant dense<0.000000e+00> : vector<4x288xf32>
    %34 = tpu.matmul %32, %33, %cst_11 {dimension_numbers = #tpu.dot_dimension_numbers<[1], [0], [0], [1], [0, 0, 1, 1], [], []>} : vector<4x4xbf16>, vector<4x288xbf16>, vector<4x288xf32> -> vector<4x288xf32>
    %35 = arith.addf %27, %34 : vector<4x288xf32>
    %c1 = arith.constant 1 : index
    %c0_12 = arith.constant 0 : index
    %c0_13 = arith.constant 0 : index
    %36 = vector.load %arg2[%c1, %c0_12, %c0_13] : memref<9x4x4xbf16, #tpu.memory_space<vmem>>, vector<1x4x4xbf16>
    %37 = vector.shape_cast %36 : vector<1x4x4xbf16> to vector<4x4xbf16>
    %38 = vector.extract_strided_slice %30 {offsets = [0, 1], sizes = [4, 288], strides = [1, 1]} : vector<4x290xbf16> to vector<4x288xbf16>
    %cst_14 = arith.constant dense<0.000000e+00> : vector<4x288xf32>
    %39 = tpu.matmul %37, %38, %cst_14 {dimension_numbers = #tpu.dot_dimension_numbers<[1], [0], [0], [1], [0, 0, 1, 1], [], []>} : vector<4x4xbf16>, vector<4x288xbf16>, vector<4x288xf32> -> vector<4x288xf32>
    %40 = arith.addf %35, %39 : vector<4x288xf32>
    %c2 = arith.constant 2 : index
    %c0_15 = arith.constant 0 : index
    %c0_16 = arith.constant 0 : index
    %41 = vector.load %arg2[%c2, %c0_15, %c0_16] : memref<9x4x4xbf16, #tpu.memory_space<vmem>>, vector<1x4x4xbf16>
    %42 = vector.shape_cast %41 : vector<1x4x4xbf16> to vector<4x4xbf16>
    %43 = vector.extract_strided_slice %30 {offsets = [0, 2], sizes = [4, 288], strides = [1, 1]} : vector<4x290xbf16> to vector<4x288xbf16>
    %cst_17 = arith.constant dense<0.000000e+00> : vector<4x288xf32>
    %44 = tpu.matmul %42, %43, %cst_17 {dimension_numbers = #tpu.dot_dimension_numbers<[1], [0], [0], [1], [0, 0, 1, 1], [], []>} : vector<4x4xbf16>, vector<4x288xbf16>, vector<4x288xf32> -> vector<4x288xf32>
    %45 = arith.addf %40, %44 : vector<4x288xf32>
    %c0_18 = arith.constant 0 : index
    %c0_19 = arith.constant 0 : index
    %c18 = arith.constant 18 : index
    %46 = vector.load %arg1[%c0_18, %c0_19, %c18] : memref<1x4x342xf32, #tpu.memory_space<vmem>>, vector<1x4x290xf32>
    %47 = vector.shape_cast %46 : vector<1x4x290xf32> to vector<4x290xf32>
    %48 = arith.truncf %47 : vector<4x290xf32> to vector<4x290xbf16>
    %c3 = arith.constant 3 : index
    %c0_20 = arith.constant 0 : index
    %c0_21 = arith.constant 0 : index
    %49 = vector.load %arg2[%c3, %c0_20, %c0_21] : memref<9x4x4xbf16, #tpu.memory_space<vmem>>, vector<1x4x4xbf16>
    %50 = vector.shape_cast %49 : vector<1x4x4xbf16> to vector<4x4xbf16>
    %51 = vector.extract_strided_slice %48 {offsets = [0, 0], sizes = [4, 288], strides = [1, 1]} : vector<4x290xbf16> to vector<4x288xbf16>
    %cst_22 = arith.constant dense<0.000000e+00> : vector<4x288xf32>
    %52 = tpu.matmul %50, %51, %cst_22 {dimension_numbers = #tpu.dot_dimension_numbers<[1], [0], [0], [1], [0, 0, 1, 1], [], []>} : vector<4x4xbf16>, vector<4x288xbf16>, vector<4x288xf32> -> vector<4x288xf32>
    %53 = arith.addf %45, %52 : vector<4x288xf32>
    %c4 = arith.constant 4 : index
    %c0_23 = arith.constant 0 : index
    %c0_24 = arith.constant 0 : index
    %54 = vector.load %arg2[%c4, %c0_23, %c0_24] : memref<9x4x4xbf16, #tpu.memory_space<vmem>>, vector<1x4x4xbf16>
    %55 = vector.shape_cast %54 : vector<1x4x4xbf16> to vector<4x4xbf16>
    %56 = vector.extract_strided_slice %48 {offsets = [0, 1], sizes = [4, 288], strides = [1, 1]} : vector<4x290xbf16> to vector<4x288xbf16>
    %cst_25 = arith.constant dense<0.000000e+00> : vector<4x288xf32>
    %57 = tpu.matmul %55, %56, %cst_25 {dimension_numbers = #tpu.dot_dimension_numbers<[1], [0], [0], [1], [0, 0, 1, 1], [], []>} : vector<4x4xbf16>, vector<4x288xbf16>, vector<4x288xf32> -> vector<4x288xf32>
    %58 = arith.addf %53, %57 : vector<4x288xf32>
    %c5 = arith.constant 5 : index
    %c0_26 = arith.constant 0 : index
    %c0_27 = arith.constant 0 : index
    %59 = vector.load %arg2[%c5, %c0_26, %c0_27] : memref<9x4x4xbf16, #tpu.memory_space<vmem>>, vector<1x4x4xbf16>
    %60 = vector.shape_cast %59 : vector<1x4x4xbf16> to vector<4x4xbf16>
    %61 = vector.extract_strided_slice %48 {offsets = [0, 2], sizes = [4, 288], strides = [1, 1]} : vector<4x290xbf16> to vector<4x288xbf16>
    %cst_28 = arith.constant dense<0.000000e+00> : vector<4x288xf32>
    %62 = tpu.matmul %60, %61, %cst_28 {dimension_numbers = #tpu.dot_dimension_numbers<[1], [0], [0], [1], [0, 0, 1, 1], [], []>} : vector<4x4xbf16>, vector<4x288xbf16>, vector<4x288xf32> -> vector<4x288xf32>
    %63 = arith.addf %58, %62 : vector<4x288xf32>
    %c0_29 = arith.constant 0 : index
    %c0_30 = arith.constant 0 : index
    %c36 = arith.constant 36 : index
    %64 = vector.load %arg1[%c0_29, %c0_30, %c36] : memref<1x4x342xf32, #tpu.memory_space<vmem>>, vector<1x4x290xf32>
    %65 = vector.shape_cast %64 : vector<1x4x290xf32> to vector<4x290xf32>
    %66 = arith.truncf %65 : vector<4x290xf32> to vector<4x290xbf16>
    %c6 = arith.constant 6 : index
    %c0_31 = arith.constant 0 : index
    %c0_32 = arith.constant 0 : index
    %67 = vector.load %arg2[%c6, %c0_31, %c0_32] : memref<9x4x4xbf16, #tpu.memory_space<vmem>>, vector<1x4x4xbf16>
    %68 = vector.shape_cast %67 : vector<1x4x4xbf16> to vector<4x4xbf16>
    %69 = vector.extract_strided_slice %66 {offsets = [0, 0], sizes = [4, 288], strides = [1, 1]} : vector<4x290xbf16> to vector<4x288xbf16>
    %cst_33 = arith.constant dense<0.000000e+00> : vector<4x288xf32>
    %70 = tpu.matmul %68, %69, %cst_33 {dimension_numbers = #tpu.dot_dimension_numbers<[1], [0], [0], [1], [0, 0, 1, 1], [], []>} : vector<4x4xbf16>, vector<4x288xbf16>, vector<4x288xf32> -> vector<4x288xf32>
    %71 = arith.addf %63, %70 : vector<4x288xf32>
    %c7 = arith.constant 7 : index
    %c0_34 = arith.constant 0 : index
    %c0_35 = arith.constant 0 : index
    %72 = vector.load %arg2[%c7, %c0_34, %c0_35] : memref<9x4x4xbf16, #tpu.memory_space<vmem>>, vector<1x4x4xbf16>
    %73 = vector.shape_cast %72 : vector<1x4x4xbf16> to vector<4x4xbf16>
    %74 = vector.extract_strided_slice %66 {offsets = [0, 1], sizes = [4, 288], strides = [1, 1]} : vector<4x290xbf16> to vector<4x288xbf16>
    %cst_36 = arith.constant dense<0.000000e+00> : vector<4x288xf32>
    %75 = tpu.matmul %73, %74, %cst_36 {dimension_numbers = #tpu.dot_dimension_numbers<[1], [0], [0], [1], [0, 0, 1, 1], [], []>} : vector<4x4xbf16>, vector<4x288xbf16>, vector<4x288xf32> -> vector<4x288xf32>
    %76 = arith.addf %71, %75 : vector<4x288xf32>
    %c8 = arith.constant 8 : index
    %c0_37 = arith.constant 0 : index
    %c0_38 = arith.constant 0 : index
    %77 = vector.load %arg2[%c8, %c0_37, %c0_38] : memref<9x4x4xbf16, #tpu.memory_space<vmem>>, vector<1x4x4xbf16>
    %78 = vector.shape_cast %77 : vector<1x4x4xbf16> to vector<4x4xbf16>
    %79 = vector.extract_strided_slice %66 {offsets = [0, 2], sizes = [4, 288], strides = [1, 1]} : vector<4x290xbf16> to vector<4x288xbf16>
    %cst_39 = arith.constant dense<0.000000e+00> : vector<4x288xf32>
    %80 = tpu.matmul %78, %79, %cst_39 {dimension_numbers = #tpu.dot_dimension_numbers<[1], [0], [0], [1], [0, 0, 1, 1], [], []>} : vector<4x4xbf16>, vector<4x288xbf16>, vector<4x288xf32> -> vector<4x288xf32>
    %81 = arith.addf %76, %80 : vector<4x288xf32>
    %c0_40 = arith.constant 0 : index
    %c0_41 = arith.constant 0 : index
    %82 = vector.load %arg3[%c0_40, %c0_41] : memref<4x1xf32, #tpu.memory_space<vmem>>, vector<4x1xf32>
    %83 = vector.broadcast %82 : vector<4x1xf32> to vector<4x288xf32>
    %84 = arith.addf %81, %83 : vector<4x288xf32>
    %85 = vector.broadcast %20 : vector<1x288xf32> to vector<4x288xf32>
    %86 = arith.mulf %84, %85 : vector<4x288xf32>
    %c0_42 = arith.constant 0 : index
    %c0_43 = arith.constant 0 : index
    %87 = vector.load %arg7[%c0_42, %c0_43] : memref<4x288xf32, #tpu.memory_space<vmem>>, vector<4x288xf32>
    tpu.vector_store %arg7[%c0_42, %c0_43], %86 {strides = array<i32>} : memref<4x288xf32, #tpu.memory_space<vmem>>, vector<4x288xf32>,
    %cst_44 = arith.constant dense<0.000000e+00> : vector<4xf32>
    %88 = vector.multi_reduction <add>, %86, %cst_44 [1] : vector<4x288xf32> to vector<4xf32>
    %89 = vector.shape_cast %88 : vector<4xf32> to vector<4x1xf32>
    %90 = arith.addf %25, %89 : vector<4x1xf32>
    %91 = arith.mulf %86, %86 : vector<4x288xf32>
    %cst_45 = arith.constant dense<0.000000e+00> : vector<4xf32>
    %92 = vector.multi_reduction <add>, %91, %cst_45 [1] : vector<4x288xf32> to vector<4xf32>
    %93 = vector.shape_cast %92 : vector<4xf32> to vector<4x1xf32>
    %94 = arith.addf %26, %93 : vector<4x1xf32>
    %cst_46 = arith.constant 3.906250e-03 : f32
    %95 = vector.broadcast %cst_46 : f32 to vector<4x1xf32>
    %96 = arith.mulf %90, %95 : vector<4x1xf32>
    %cst_47 = arith.constant 3.906250e-03 : f32
    %97 = vector.broadcast %cst_47 : f32 to vector<4x1xf32>
    %98 = arith.mulf %94, %97 : vector<4x1xf32>
    %99 = arith.mulf %96, %96 : vector<4x1xf32>
    %100 = arith.subf %98, %99 : vector<4x1xf32>
    %cst_48 = arith.constant 0.000000e+00 : f32
    %101 = vector.broadcast %cst_48 : f32 to vector<4x1xf32>
    %102 = arith.maximumf %100, %101 : vector<4x1xf32>
    %cst_49 = arith.constant 9.99999974E-6 : f32
    %103 = vector.broadcast %cst_49 : f32 to vector<4x1xf32>
    %104 = arith.addf %102, %103 : vector<4x1xf32>
    %105 = math.rsqrt %104 : vector<4x1xf32>
    %c0_50 = arith.constant 0 : index
    %c0_51 = arith.constant 0 : index
    %106 = vector.load %arg7[%c0_50, %c0_51] : memref<4x288xf32, #tpu.memory_space<vmem>>, vector<4x288xf32>
    %107 = vector.broadcast %96 : vector<4x1xf32> to vector<4x288xf32>
    %108 = arith.subf %106, %107 : vector<4x288xf32>
    %109 = vector.broadcast %105 : vector<4x1xf32> to vector<4x288xf32>
    %110 = arith.mulf %108, %109 : vector<4x288xf32>
    %cst_52 = arith.constant 0.000000e+00 : f32
    %111 = vector.broadcast %cst_52 : f32 to vector<4x288xf32>
    %112 = arith.maximumf %110, %111 : vector<4x288xf32>
    %113 = vector.extract_strided_slice %112 {offsets = [0, 286], sizes = [4, 2], strides = [1, 1]} : vector<4x288xf32> to vector<4x2xf32>
    %114 = vector.extract_strided_slice %112 {offsets = [0, 0], sizes = [4, 286], strides = [1, 1]} : vector<4x288xf32> to vector<4x286xf32>
    %115 = tpu.concatenate %113, %114 in 1 : vector<4x2xf32>, vector<4x286xf32> -> vector<4x288xf32>
    %116 = vector.extract_strided_slice %112 {offsets = [0, 2], sizes = [4, 286], strides = [1, 1]} : vector<4x288xf32> to vector<4x286xf32>
    %117 = vector.extract_strided_slice %112 {offsets = [0, 0], sizes = [4, 2], strides = [1, 1]} : vector<4x288xf32> to vector<4x2xf32>
    %118 = tpu.concatenate %116, %117 in 1 : vector<4x286xf32>, vector<4x2xf32> -> vector<4x288xf32>
    %119 = vector.shape_cast %24 : vector<1x288xi1> to vector<1x288xi1>
    %120 = vector.broadcast %119 : vector<1x288xi1> to vector<4x288xi1>
    %121 = arith.select %120, %118, %112 : vector<4x288xi1>, vector<4x288xf32>
    %122 = vector.shape_cast %22 : vector<1x288xi1> to vector<1x288xi1>
    %123 = vector.broadcast %122 : vector<1x288xi1> to vector<4x288xi1>
    %124 = arith.select %123, %115, %121 : vector<4x288xi1>, vector<4x288xf32>
    %c0_53 = arith.constant 0 : index
    %c19 = arith.constant 19 : index
    %125 = vector.load %arg8[%c0_53, %c19] : memref<4x342xf32, #tpu.memory_space<vmem>>, vector<4x288xf32>
    tpu.vector_store %arg8[%c0_53, %c19], %124 {strides = array<i32>} : memref<4x342xf32, #tpu.memory_space<vmem>>, vector<4x288xf32>,
    %126 = vector.extract_strided_slice %112 {offsets = [0, 1], sizes = [4, 1], strides = [1, 1]} : vector<4x288xf32> to vector<4x1xf32>
    %c0_54 = arith.constant 0 : index
    %c18_55 = arith.constant 18 : index
    %127 = vector.load %arg8[%c0_54, %c18_55] : memref<4x342xf32, #tpu.memory_space<vmem>>, vector<4x1xf32>
    tpu.vector_store %arg8[%c0_54, %c18_55], %126 {strides = array<i32>} : memref<4x342xf32, #tpu.memory_space<vmem>>, vector<4x1xf32>,
    %cst_56 = arith.constant 0.000000e+00 : f32
    %128 = vector.broadcast %cst_56 : f32 to vector<4x18xf32>
    %c0_57 = arith.constant 0 : index
    %c324 = arith.constant 324 : index
    %129 = vector.load %arg8[%c0_57, %c324] : memref<4x342xf32, #tpu.memory_space<vmem>>, vector<4x18xf32>
    tpu.vector_store %arg8[%c0_57, %c324], %128 {strides = array<i32>} : memref<4x342xf32, #tpu.memory_space<vmem>>, vector<4x18xf32>,
    %c0_58 = arith.constant 0 : index
    %c36_59 = arith.constant 36 : index
    %130 = vector.load %arg8[%c0_58, %c36_59] : memref<4x342xf32, #tpu.memory_space<vmem>>, vector<4x18xf32>
    %c0_60 = arith.constant 0 : index
    %c0_61 = arith.constant 0 : index
    %131 = vector.load %arg8[%c0_60, %c0_61] : memref<4x342xf32, #tpu.memory_space<vmem>>, vector<4x18xf32>
    tpu.vector_store %arg8[%c0_60, %c0_61], %130 {strides = array<i32>} : memref<4x342xf32, #tpu.memory_space<vmem>>, vector<4x18xf32>,
    %c0_62 = arith.constant 0 : index
    %c270 = arith.constant 270 : index
    %132 = vector.load %arg8[%c0_62, %c270] : memref<4x342xf32, #tpu.memory_space<vmem>>, vector<4x18xf32>
    %c0_63 = arith.constant 0 : index
    %c306 = arith.constant 306 : index
    %133 = vector.load %arg8[%c0_63, %c306] : memref<4x342xf32, #tpu.memory_space<vmem>>, vector<4x18xf32>
    tpu.vector_store %arg8[%c0_63, %c306], %132 {strides = array<i32>} : memref<4x342xf32, #tpu.memory_space<vmem>>, vector<4x18xf32>,
    %cst_64 = arith.constant 0.000000e+00 : f32
    %134 = vector.broadcast %cst_64 : f32 to vector<4x1xf32>
    %cst_65 = arith.constant 0.000000e+00 : f32
    %135 = vector.broadcast %cst_65 : f32 to vector<4x1xf32>
    %cst_66 = arith.constant 0.000000e+00 : f32
    %136 = vector.broadcast %cst_66 : f32 to vector<4x288xf32>
    %c0_67 = arith.constant 0 : index
    %c0_68 = arith.constant 0 : index
    %137 = vector.load %arg8[%c0_67, %c0_68] : memref<4x342xf32, #tpu.memory_space<vmem>>, vector<4x290xf32>
    %138 = arith.truncf %137 : vector<4x290xf32> to vector<4x290xbf16>
    %c0_69 = arith.constant 0 : index
    %c0_70 = arith.constant 0 : index
    %c0_71 = arith.constant 0 : index
    %139 = vector.load %arg4[%c0_69, %c0_70, %c0_71] : memref<9x4x4xbf16, #tpu.memory_space<vmem>>, vector<1x4x4xbf16>
    %140 = vector.shape_cast %139 : vector<1x4x4xbf16> to vector<4x4xbf16>
    %141 = vector.extract_strided_slice %138 {offsets = [0, 0], sizes = [4, 288], strides = [1, 1]} : vector<4x290xbf16> to vector<4x288xbf16>
    %cst_72 = arith.constant dense<0.000000e+00> : vector<4x288xf32>
    %142 = tpu.matmul %140, %141, %cst_72 {dimension_numbers = #tpu.dot_dimension_numbers<[1], [0], [0], [1], [0, 0, 1, 1], [], []>} : vector<4x4xbf16>, vector<4x288xbf16>, vector<4x288xf32> -> vector<4x288xf32>
    %143 = arith.addf %136, %142 : vector<4x288xf32>
    %c1_73 = arith.constant 1 : index
    %c0_74 = arith.constant 0 : index
    %c0_75 = arith.constant 0 : index
    %144 = vector.load %arg4[%c1_73, %c0_74, %c0_75] : memref<9x4x4xbf16, #tpu.memory_space<vmem>>, vector<1x4x4xbf16>
    %145 = vector.shape_cast %144 : vector<1x4x4xbf16> to vector<4x4xbf16>
    %146 = vector.extract_strided_slice %138 {offsets = [0, 1], sizes = [4, 288], strides = [1, 1]} : vector<4x290xbf16> to vector<4x288xbf16>
    %cst_76 = arith.constant dense<0.000000e+00> : vector<4x288xf32>
    %147 = tpu.matmul %145, %146, %cst_76 {dimension_numbers = #tpu.dot_dimension_numbers<[1], [0], [0], [1], [0, 0, 1, 1], [], []>} : vector<4x4xbf16>, vector<4x288xbf16>, vector<4x288xf32> -> vector<4x288xf32>
    %148 = arith.addf %143, %147 : vector<4x288xf32>
    %c2_77 = arith.constant 2 : index
    %c0_78 = arith.constant 0 : index
    %c0_79 = arith.constant 0 : index
    %149 = vector.load %arg4[%c2_77, %c0_78, %c0_79] : memref<9x4x4xbf16, #tpu.memory_space<vmem>>, vector<1x4x4xbf16>
    %150 = vector.shape_cast %149 : vector<1x4x4xbf16> to vector<4x4xbf16>
    %151 = vector.extract_strided_slice %138 {offsets = [0, 2], sizes = [4, 288], strides = [1, 1]} : vector<4x290xbf16> to vector<4x288xbf16>
    %cst_80 = arith.constant dense<0.000000e+00> : vector<4x288xf32>
    %152 = tpu.matmul %150, %151, %cst_80 {dimension_numbers = #tpu.dot_dimension_numbers<[1], [0], [0], [1], [0, 0, 1, 1], [], []>} : vector<4x4xbf16>, vector<4x288xbf16>, vector<4x288xf32> -> vector<4x288xf32>
    %153 = arith.addf %148, %152 : vector<4x288xf32>
    %c0_81 = arith.constant 0 : index
    %c18_82 = arith.constant 18 : index
    %154 = vector.load %arg8[%c0_81, %c18_82] : memref<4x342xf32, #tpu.memory_space<vmem>>, vector<4x290xf32>
    %155 = arith.truncf %154 : vector<4x290xf32> to vector<4x290xbf16>
    %c3_83 = arith.constant 3 : index
    %c0_84 = arith.constant 0 : index
    %c0_85 = arith.constant 0 : index
    %156 = vector.load %arg4[%c3_83, %c0_84, %c0_85] : memref<9x4x4xbf16, #tpu.memory_space<vmem>>, vector<1x4x4xbf16>
    %157 = vector.shape_cast %156 : vector<1x4x4xbf16> to vector<4x4xbf16>
    %158 = vector.extract_strided_slice %155 {offsets = [0, 0], sizes = [4, 288], strides = [1, 1]} : vector<4x290xbf16> to vector<4x288xbf16>
    %cst_86 = arith.constant dense<0.000000e+00> : vector<4x288xf32>
    %159 = tpu.matmul %157, %158, %cst_86 {dimension_numbers = #tpu.dot_dimension_numbers<[1], [0], [0], [1], [0, 0, 1, 1], [], []>} : vector<4x4xbf16>, vector<4x288xbf16>, vector<4x288xf32> -> vector<4x288xf32>
    %160 = arith.addf %153, %159 : vector<4x288xf32>
    %c4_87 = arith.constant 4 : index
    %c0_88 = arith.constant 0 : index
    %c0_89 = arith.constant 0 : index
    %161 = vector.load %arg4[%c4_87, %c0_88, %c0_89] : memref<9x4x4xbf16, #tpu.memory_space<vmem>>, vector<1x4x4xbf16>
    %162 = vector.shape_cast %161 : vector<1x4x4xbf16> to vector<4x4xbf16>
    %163 = vector.extract_strided_slice %155 {offsets = [0, 1], sizes = [4, 288], strides = [1, 1]} : vector<4x290xbf16> to vector<4x288xbf16>
    %cst_90 = arith.constant dense<0.000000e+00> : vector<4x288xf32>
    %164 = tpu.matmul %162, %163, %cst_90 {dimension_numbers = #tpu.dot_dimension_numbers<[1], [0], [0], [1], [0, 0, 1, 1], [], []>} : vector<4x4xbf16>, vector<4x288xbf16>, vector<4x288xf32> -> vector<4x288xf32>
    %165 = arith.addf %160, %164 : vector<4x288xf32>
    %c5_91 = arith.constant 5 : index
    %c0_92 = arith.constant 0 : index
    %c0_93 = arith.constant 0 : index
    %166 = vector.load %arg4[%c5_91, %c0_92, %c0_93] : memref<9x4x4xbf16, #tpu.memory_space<vmem>>, vector<1x4x4xbf16>
    %167 = vector.shape_cast %166 : vector<1x4x4xbf16> to vector<4x4xbf16>
    %168 = vector.extract_strided_slice %155 {offsets = [0, 2], sizes = [4, 288], strides = [1, 1]} : vector<4x290xbf16> to vector<4x288xbf16>
    %cst_94 = arith.constant dense<0.000000e+00> : vector<4x288xf32>
    %169 = tpu.matmul %167, %168, %cst_94 {dimension_numbers = #tpu.dot_dimension_numbers<[1], [0], [0], [1], [0, 0, 1, 1], [], []>} : vector<4x4xbf16>, vector<4x288xbf16>, vector<4x288xf32> -> vector<4x288xf32>
    %170 = arith.addf %165, %169 : vector<4x288xf32>
    %c0_95 = arith.constant 0 : index
    %c36_96 = arith.constant 36 : index
    %171 = vector.load %arg8[%c0_95, %c36_96] : memref<4x342xf32, #tpu.memory_space<vmem>>, vector<4x290xf32>
    %172 = arith.truncf %171 : vector<4x290xf32> to vector<4x290xbf16>
    %c6_97 = arith.constant 6 : index
    %c0_98 = arith.constant 0 : index
    %c0_99 = arith.constant 0 : index
    %173 = vector.load %arg4[%c6_97, %c0_98, %c0_99] : memref<9x4x4xbf16, #tpu.memory_space<vmem>>, vector<1x4x4xbf16>
    %174 = vector.shape_cast %173 : vector<1x4x4xbf16> to vector<4x4xbf16>
    %175 = vector.extract_strided_slice %172 {offsets = [0, 0], sizes = [4, 288], strides = [1, 1]} : vector<4x290xbf16> to vector<4x288xbf16>
    %cst_100 = arith.constant dense<0.000000e+00> : vector<4x288xf32>
    %176 = tpu.matmul %174, %175, %cst_100 {dimension_numbers = #tpu.dot_dimension_numbers<[1], [0], [0], [1], [0, 0, 1, 1], [], []>} : vector<4x4xbf16>, vector<4x288xbf16>, vector<4x288xf32> -> vector<4x288xf32>
    %177 = arith.addf %170, %176 : vector<4x288xf32>
    %c7_101 = arith.constant 7 : index
    %c0_102 = arith.constant 0 : index
    %c0_103 = arith.constant 0 : index
    %178 = vector.load %arg4[%c7_101, %c0_102, %c0_103] : memref<9x4x4xbf16, #tpu.memory_space<vmem>>, vector<1x4x4xbf16>
    %179 = vector.shape_cast %178 : vector<1x4x4xbf16> to vector<4x4xbf16>
    %180 = vector.extract_strided_slice %172 {offsets = [0, 1], sizes = [4, 288], strides = [1, 1]} : vector<4x290xbf16> to vector<4x288xbf16>
    %cst_104 = arith.constant dense<0.000000e+00> : vector<4x288xf32>
    %181 = tpu.matmul %179, %180, %cst_104 {dimension_numbers = #tpu.dot_dimension_numbers<[1], [0], [0], [1], [0, 0, 1, 1], [], []>} : vector<4x4xbf16>, vector<4x288xbf16>, vector<4x288xf32> -> vector<4x288xf32>
    %182 = arith.addf %177, %181 : vector<4x288xf32>
    %c8_105 = arith.constant 8 : index
    %c0_106 = arith.constant 0 : index
    %c0_107 = arith.constant 0 : index
    %183 = vector.load %arg4[%c8_105, %c0_106, %c0_107] : memref<9x4x4xbf16, #tpu.memory_space<vmem>>, vector<1x4x4xbf16>
    %184 = vector.shape_cast %183 : vector<1x4x4xbf16> to vector<4x4xbf16>
    %185 = vector.extract_strided_slice %172 {offsets = [0, 2], sizes = [4, 288], strides = [1, 1]} : vector<4x290xbf16> to vector<4x288xbf16>
    %cst_108 = arith.constant dense<0.000000e+00> : vector<4x288xf32>
    %186 = tpu.matmul %184, %185, %cst_108 {dimension_numbers = #tpu.dot_dimension_numbers<[1], [0], [0], [1], [0, 0, 1, 1], [], []>} : vector<4x4xbf16>, vector<4x288xbf16>, vector<4x288xf32> -> vector<4x288xf32>
    %187 = arith.addf %182, %186 : vector<4x288xf32>
    %c0_109 = arith.constant 0 : index
    %c0_110 = arith.constant 0 : index
    %188 = vector.load %arg5[%c0_109, %c0_110] : memref<4x1xf32, #tpu.memory_space<vmem>>, vector<4x1xf32>
    %189 = vector.broadcast %188 : vector<4x1xf32> to vector<4x288xf32>
    %190 = arith.addf %187, %189 : vector<4x288xf32>
    %191 = vector.broadcast %20 : vector<1x288xf32> to vector<4x288xf32>
    %192 = arith.mulf %190, %191 : vector<4x288xf32>
    %c0_111 = arith.constant 0 : index
    %c0_112 = arith.constant 0 : index
    %193 = vector.load %arg7[%c0_111, %c0_112] : memref<4x288xf32, #tpu.memory_space<vmem>>, vector<4x288xf32>
    tpu.vector_store %arg7[%c0_111, %c0_112], %192 {strides = array<i32>} : memref<4x288xf32, #tpu.memory_space<vmem>>, vector<4x288xf32>,
    %cst_113 = arith.constant dense<0.000000e+00> : vector<4xf32>
    %194 = vector.multi_reduction <add>, %192, %cst_113 [1] : vector<4x288xf32> to vector<4xf32>
    %195 = vector.shape_cast %194 : vector<4xf32> to vector<4x1xf32>
    %196 = arith.addf %134, %195 : vector<4x1xf32>
    %197 = arith.mulf %192, %192 : vector<4x288xf32>
    %cst_114 = arith.constant dense<0.000000e+00> : vector<4xf32>
    %198 = vector.multi_reduction <add>, %197, %cst_114 [1] : vector<4x288xf32> to vector<4xf32>
    %199 = vector.shape_cast %198 : vector<4xf32> to vector<4x1xf32>
    %200 = arith.addf %135, %199 : vector<4x1xf32>
    %cst_115 = arith.constant 3.906250e-03 : f32
    %201 = vector.broadcast %cst_115 : f32 to vector<4x1xf32>
    %202 = arith.mulf %196, %201 : vector<4x1xf32>
    %cst_116 = arith.constant 3.906250e-03 : f32
    %203 = vector.broadcast %cst_116 : f32 to vector<4x1xf32>
    %204 = arith.mulf %200, %203 : vector<4x1xf32>
    %205 = arith.mulf %202, %202 : vector<4x1xf32>
    %206 = arith.subf %204, %205 : vector<4x1xf32>
    %cst_117 = arith.constant 0.000000e+00 : f32
    %207 = vector.broadcast %cst_117 : f32 to vector<4x1xf32>
    %208 = arith.maximumf %206, %207 : vector<4x1xf32>
    %cst_118 = arith.constant 9.99999974E-6 : f32
    %209 = vector.broadcast %cst_118 : f32 to vector<4x1xf32>
    %210 = arith.addf %208, %209 : vector<4x1xf32>
    %211 = math.rsqrt %210 : vector<4x1xf32>
    %c0_119 = arith.constant 0 : index
    %c0_120 = arith.constant 0 : index
    %c19_121 = arith.constant 19 : index
    %212 = vector.load %arg1[%c0_119, %c0_120, %c19_121] : memref<1x4x342xf32, #tpu.memory_space<vmem>>, vector<1x4x288xf32>
    %213 = vector.shape_cast %212 : vector<1x4x288xf32> to vector<4x288xf32>
    %c0_122 = arith.constant 0 : index
    %c0_123 = arith.constant 0 : index
    %214 = vector.load %arg7[%c0_122, %c0_123] : memref<4x288xf32, #tpu.memory_space<vmem>>, vector<4x288xf32>
    %215 = vector.broadcast %202 : vector<4x1xf32> to vector<4x288xf32>
    %216 = arith.subf %214, %215 : vector<4x288xf32>
    %217 = vector.broadcast %211 : vector<4x1xf32> to vector<4x288xf32>
    %218 = arith.mulf %216, %217 : vector<4x288xf32>
    %219 = arith.addf %213, %218 : vector<4x288xf32>
    %c0_124 = arith.constant 0 : index
    %c0_125 = arith.constant 0 : index
    %c0_126 = arith.constant 0 : index
    %220 = vector.load %arg6[%c0_124, %c0_125, %c0_126] : memref<1x4x288xf32, #tpu.memory_space<vmem>>, vector<1x4x288xf32>
    %221 = vector.shape_cast %220 : vector<1x4x288xf32> to vector<4x288xf32>
    %222 = vector.shape_cast %219 : vector<4x288xf32> to vector<1x4x288xf32>
    tpu.vector_store %arg6[%c0_124, %c0_125, %c0_126], %222 {strides = array<i32>} : memref<1x4x288xf32, #tpu.memory_space<vmem>>, vector<1x4x288xf32>,
    return
  }
  func.func @transform_0(%arg0: i32) -> (i32, i32, i32) {
    %c0_i32 = arith.constant 0 : i32
    %c0_i32_0 = arith.constant 0 : i32
    %c0_i32_1 = arith.constant 0 : i32
    return %arg0, %c0_i32, %c0_i32_0 : i32, i32, i32
  }
  func.func @transform_1(%arg0: i32) -> (i32, i32, i32) {
    %c0_i32 = arith.constant 0 : i32
    %c0_i32_0 = arith.constant 0 : i32
    %c0_i32_1 = arith.constant 0 : i32
    %c0_i32_2 = arith.constant 0 : i32
    return %c0_i32, %c0_i32_0, %c0_i32_1 : i32, i32, i32
  }
  func.func @transform_2(%arg0: i32) -> (i32, i32) {
    %c0_i32 = arith.constant 0 : i32
    %c0_i32_0 = arith.constant 0 : i32
    %c0_i32_1 = arith.constant 0 : i32
    return %c0_i32, %c0_i32_0 : i32, i32
  }
  func.func @transform_3(%arg0: i32) -> (i32, i32, i32) {
    %c0_i32 = arith.constant 0 : i32
    %c0_i32_0 = arith.constant 0 : i32
    %c0_i32_1 = arith.constant 0 : i32
    %c0_i32_2 = arith.constant 0 : i32
    return %c0_i32, %c0_i32_0, %c0_i32_1 : i32, i32, i32
  }
  func.func @transform_4(%arg0: i32) -> (i32, i32) {
    %c0_i32 = arith.constant 0 : i32
    %c0_i32_0 = arith.constant 0 : i32
    %c0_i32_1 = arith.constant 0 : i32
    return %c0_i32, %c0_i32_0 : i32, i32
  }
  func.func @transform_5(%arg0: i32) -> (i32, i32, i32) {
    %c0_i32 = arith.constant 0 : i32
    %c0_i32_0 = arith.constant 0 : i32
    %c0_i32_1 = arith.constant 0 : i32
    return %arg0, %c0_i32, %c0_i32_0 : i32, i32, i32
  }
}

</mosaic_0001>

<bundles_post_ra>
// kernel: tpu_custom_call.1
= control target key start
LH: loop header
LB: loop body
LE: loop exit
PB: predicated region body
PF: predicated region fallthrough
CT: control target
= control target key end

     0   :  { %10 = vsyncpa [#allocation5], 0  ;;  %s3528_s0 = inlined_call_operand.vmem [shape: f32[2,4,342], index: 0, kind: input, shape index: {}]   ;;  %s3529_s1 = inlined_call_operand.vmem [shape: bf16[9,4,4], index: 1, kind: input, shape index: {}]   ;;  %s3530_s2 = inlined_call_operand.vmem [shape: f32[4,1], index: 2, kind: input, shape index: {}]   ;;  %s3531_s3 = inlined_call_operand.vmem [shape: bf16[9,4,4], index: 3, kind: input, shape index: {}]   ;;  %s3532_s4 = inlined_call_operand.vmem [shape: f32[4,1], index: 4, kind: input, shape index: {}]   ;;  %s3533_s5 = inlined_call_operand.hbm [shape: f32[2,4,288], index: 5, kind: output, shape index: {}]  }
   0x1   :  { %12 = vsyncpa [#allocation5 + $0x1], 0  ;;  %s2995_s18 = smov 0   ;;  %s2997_s19 = smov 0  }
   0x2   :  { %s2999_s20 = smov 0   ;;  %s3001_s21 = smov 0  }
   0x3 LB: > { %s3016_s22 = sadd.s32 4294967295, %s2944_s21   ;;  %s2585_s23 = sadd.s32 4294967294, %s2944_s21   ;;  %s2944_s21 = sphi %s3001_s21, %s3566_s21   ;;  %s2940_s20 = sphi %s2999_s20, %s3565_s20   ;;  %s2936_s19 = sphi %s2997_s19, %s3564_s19   ;;  %s2932_s18 = sphi %s2995_s18, %s3563_s18  }
   0x4   : > { %s3020_s24 = sadd.s32 1, %s2944_s21   ;;  %s135_s25 = sadd.s32 1, %s2940_s20 }
   0x5   : > { %s132_s26 = ssub.s32 %s2944_s21, %s3020_s24  ;;  %p145_p0 = scmp.ne.s32.totalorder %s2940_s20, %s2936_s19 }
   0x6   : > { %p133_p1 = scmp.eq.s32.totalorder %s132_s26, 0  ;;  %p146_p2 = scmp.eq.s32.totalorder %s3016_s22, 1 }
   0x7   : > { %p151_p3 = scmp.ne.s32.totalorder %s2936_s19, %s2932_s18  ;;  %p152_p4 = scmp.eq.s32.totalorder %s2585_s23, 1 }
   0x8   : > { %s3031_s27 = scalar_select %p133_p1, %s2940_s20, %s135_s25  }
   0x9   : > { %p3033_p5 = por %p146_p2, %p145_p0  ;;  %p3037_p6 = por %p152_p4, %p151_p3 }
   0xa   : > { %p2588_p7 = scmp.ge.s32.totalorder %s2944_s21, 1  ;;  %p190_p8 = scmp.lt.s32.totalorder %s2944_s21, 3 }
   0xc   : > { %p191_p9 = pnand %p2588_p7, %p190_p8 }
   0xd   : > { %p218_p10 = scmp.lt.s32.totalorder (!%p191_p9), %s3016_s22, 1  ;;  %s2949_s10 = smov (!%p191_p9), 127  }
   0xe   : > { %194 = sbr.rel (%p191_p9) target bundleno = 1786 (0x6fa), region = 40  ;;  %s2950_s11 = smov (!%p191_p9), 126  }
   0xf   : > { %s2951_s12 = smov (!%p191_p9), 110   ;;  %s2952_s13 = smov (!%p191_p9), 109  }
  0x10   : > { %s2953_s14 = smov (!%p191_p9), 108   ;;  %s2954_s15 = smov (!%p191_p9), 92  }
  0x11   : > { %s2955_s16 = smov (!%p191_p9), 91   ;;  %s2956_s17 = smov (!%p191_p9), 90  }
  0x12   : > { %s2958_s8 = smov (!%p191_p9), 2   ;;  %s2959_s23 = smov (!%p191_p9), 98  }
  0x13   : > { %v2946_v0 = vmov 0.0   ;;  %vm2947_vm0 = vmmov 0   ;;  %s219_s30 = scalar_select %p218_p10, %s3016_s22, 1  ;;  %v2948_v1 = vmov 0   ;;  %v1273_v12 = vld [vmem:[%s3530_s2] sm:$0xf] }
  0x14   : > { %2702 = vmatprep.subr.bf16.mxu1 %v2946_v0  ;;  %2704 = vmatprep.mubr.msk.bf16.mxu1 %vm2947_vm0, %v2946_v0  ;;  %vm318_vm1 = vcmask 1041408   ;;  %v2593_v16 = vld [vmem:[%s3529_s1 + $0x2] sm:$0x3]  ;;  %vm314_vm2 = vcmask 31744   ;;  %vm311_vm3 = vcmask 1039360   ;;  %vm510_vm4 = vcmask 1031168  }
  0x15   : > { %s2811_s6 = smul.u32 12, %s219_s30  ;;  %360 = vmatprep.mubr.bf16.mxu0 %v2948_v1  ;;  %2876 = vset.pattern.permute.xlu0 %v2948_v1  ;;  %v299_v27 = vld [vmem:[%s3529_s1] sm:$0x3]  ;;  %vm628_vm5 = vcmask 900096   ;;  %v2600_v36 = vld [vmem:[%s3529_s1 + $0x4] sm:$0x3] }
  0x16   : > { %2877 = vset.pattern.permute.xlu1 %v2948_v1  ;;  %vm3540_vm6 = vcmask 891904   ;;  %v2604_v44 = vld [vmem:[%s3529_s1 + $0x6] sm:$0x3]  ;;  %vm3539_vm7 = vcmask 883712   ;;  %v2608_v52 = vld [vmem:[%s3529_s1 + $0x8] sm:$0x3] }
  0x17   : > { %s3054_s9 = scalar_lea.vmem %s3528_s0, %s2811_s6  ;;  %vm3538_vm8 = vcmask 752640   ;;  %v2612_v60 = vld [vmem:[%s3529_s1 + $0xa] sm:$0x3]  ;;  %vm3535_vm9 = vcmask 744448   ;;  %vm3534_vm10 = vcmask 736256   ;;  %s2960_s25 = smov 30  }
  0x18   : > { %v292_v2 = vld [vmem:[%s3054_s9 + $0x8] sm:$0xf]  ;;  %v291_v3 = vld [vmem:[%s3054_s9] sm:$0xff]  ;;  %s2961_s26 = smov 19   ;;  %s2962_s30 = smov 17  }
  0x19   : > { %v298_v4 = vpack.c.bf16 %v292_v2, %v292_v2  ;;  %v3058_v5 = vpack.c.bf16 %v291_v3, %v291_v3  ;;  %v294_v6 = vcombine.high %v291_v3, %v291_v3  ;;  %v610_v8 = vld [vmem:[%s3054_s9 + $0x8] sm:$0xf]  ;;  %s2963_s6 = smov 36   ;;  %s215_s7 = sand.u32 1, %s2936_s19  }
  0x1a   : > { %v616_v9 = vpack.c.bf16 %v610_v8, %v610_v8  ;;  %v942_v10 = vld [vmem:[%s3054_s9 + $0x8] sm:$0xf] }
  0x1b   : > { %309 = vrot.lane.b32.xlu1 %v298_v4, %s2949_s10  ;;  %305 = vrot.lane.b32.xlu0 %v3058_v5, %s2949_s10  ;;  %v297_v7 = vpack.c.bf16 %v294_v6, %v294_v6  ;;  %v948_v11 = vpack.c.bf16 %v942_v10, %v942_v10  ;;  %v419_v17 = vsel %vm318_vm1, %v298_v4, 0  ;;  %v413_v23 = vsel %vm318_vm1, %v3058_v5, 0  ;;  %v2616_v6 = vld [vmem:[%s3529_s1 + $0xc] sm:$0x3] }
  0x1f   : > { %307 = vrot.lane.b32.xlu0 %v297_v7, %s2949_s10  ;;  %504 = vrot.lane.b32.xlu1 %v3058_v5, %s2950_s11 }
  0x23   : > { %508 = vrot.lane.b32.xlu1 %v298_v4, %s2950_s11  ;;  %506 = vrot.lane.b32.xlu0 %v297_v7, %s2950_s11 }
  0x27   : > { %622 = vrot.lane.b32.xlu0 %v3058_v5, %s2951_s12  ;;  %624 = vrot.lane.b32.xlu1 %v297_v7, %s2951_s12 }
  0x2b   : > { %626 = vrot.lane.b32.xlu0 %v616_v9, %s2951_s12  ;;  %729 = vrot.lane.b32.xlu1 %v3058_v5, %s2952_s13 }
  0x2f   : > { %733 = vrot.lane.b32.xlu1 %v616_v9, %s2952_s13  ;;  %731 = vrot.lane.b32.xlu0 %v297_v7, %s2952_s13 }
  0x33   : > { %836 = vrot.lane.b32.xlu0 %v3058_v5, %s2953_s14  ;;  %838 = vrot.lane.b32.xlu1 %v297_v7, %s2953_s14 }
  0x37   : > { %840 = vrot.lane.b32.xlu0 %v616_v9, %s2953_s14  ;;  %954 = vrot.lane.b32.xlu1 %v3058_v5, %s2954_s15 }
  0x3b   : > { %958 = vrot.lane.b32.xlu1 %v948_v11, %s2954_s15  ;;  %956 = vrot.lane.b32.xlu0 %v297_v7, %s2954_s15 }
  0x3f   : > { %1061 = vrot.lane.b32.xlu0 %v3058_v5, %s2955_s16  ;;  %1063 = vrot.lane.b32.xlu1 %v297_v7, %s2955_s16 }
  0x43   : > { %1065 = vrot.lane.b32.xlu0 %v948_v11, %s2955_s16  ;;  %1168 = vrot.lane.b32.xlu1 %v3058_v5, %s2956_s17 }
  0x47   : > { %1172 = vrot.lane.b32.xlu1 %v948_v11, %s2956_s17  ;;  %1170 = vrot.lane.b32.xlu0 %v297_v7, %s2956_s17 }
  0x4b   : > { %1276 = vperm.xlu0 %2876, %v1273_v12  }
  0x8d   : > { %v310_v13 = vpop.permute.xlu1 %309  ;;  %v306_v14 = vpop.permute.xlu0 %305 }
  0x8e   : > { %v326_v15 = vsel %vm318_vm1, %v310_v13, 0 }
  0x8f   : > { %2703 = vmatpush3.bf16.msra.mxu1 %v326_v15 }
  0x90   : > { %2708 = vmatprep.subr.bf16.mxu1 %v2946_v0 }
  0x91   : > { %v308_v18 = vpop.permute.xlu0 %307  ;;  %v505_v19 = vpop.permute.xlu1 %504 }
  0x92   : > { %2705 = vmatmul.mubr.msk.bf16.vlgmr.msra.gmra.mxu1 %vm314_vm2, %v2593_v16  ;;  %v313_v20 = vsel %vm311_vm3, %v308_v18, %v310_v13  ;;  %v312_v21 = vsel %vm311_vm3, %v306_v14, %v308_v18  ;;  %v2620_v13 = vld [vmem:[%s3529_s1 + $0xe] sm:$0x3] }
  0x93   : > { %2594 = vmatprep.subr.msk.bf16.mxu0 %vm318_vm1, %v313_v20  ;;  %v320_v22 = vsel %vm318_vm1, %v312_v21, 0  ;;  %2709 = vmatpush3.bf16.msra.mxu1 %v419_v17  ;;  %v2624_v17 = vld [vmem:[%s3529_s1 + $0x10] sm:$0x3] }
  0x94   : > { %343 = vmatpush1.bf16.msra.mxu0 %v320_v22  ;;  %2710 = vmatprep.mubr.msk.bf16.mxu1 %vm2947_vm0, %v2946_v0 }
  0x95   : > { %2597 = vmatprep.subr.msk.bf16.mxu0 %vm318_vm1, %v297_v7  ;;  %v509_v24 = vpop.permute.xlu1 %508  ;;  %v507_v25 = vpop.permute.xlu0 %506  ;;  %2714 = vmatprep.subr.bf16.mxu1 %v2946_v0 }
  0x96   : > { %v512_v26 = vsel %vm510_vm4, %v507_v25, %v509_v24  ;;  %v523_v28 = vsel %vm318_vm1, %v509_v24, 0  ;;  %v511_v31 = vsel %vm510_vm4, %v505_v19, %v507_v25 }
  0x97   : > { %2595 = vmatmul.mubr.msk.bf16.vlgmr.msra.gmra.mxu0 %vm314_vm2, %v2593_v16  ;;  %v517_v32 = vsel %vm318_vm1, %v511_v31, 0 }
  0x98   : > { %436 = vmatpush1.bf16.msra.mxu0 %v413_v23  ;;  %453 = vmatprep.mubr.bf16.mxu0 %v2948_v1 }
  0x99   : > { %2601 = vmatprep.subr.msk.bf16.mxu0 %vm318_vm1, %v512_v26  ;;  %v623_v29 = vpop.permute.xlu0 %622  ;;  %v625_v30 = vpop.permute.xlu1 %624 }
  0x9a   : > { %2711 = vmatmul.mubr.msk.bf16.vlgmr.msra.gmra.mxu1 %vm314_vm2, %v299_v27  ;;  %v629_v39 = vsel %vm628_vm5, %v623_v29, %v625_v30 }
  0x9b   : > { %2715 = vmatpush3.bf16.msra.mxu1 %v523_v28  ;;  %2716 = vmatprep.mubr.msk.bf16.mxu1 %vm2947_vm0, %v2946_v0  ;;  %v635_v41 = vsel %vm318_vm1, %v629_v39, 0  ;;  %v224_v39 = vlaneseq }
  0x9c   : > { %2720 = vmatprep.subr.bf16.mxu1 %v2946_v0 }
  0x9d   : > { %v627_v33 = vpop.permute.xlu0 %626  ;;  %v730_v34 = vpop.permute.xlu1 %729 }
  0x9e   : > { %v630_v35 = vsel %vm628_vm5, %v625_v30, %v627_v33  ;;  %v641_v37 = vsel %vm318_vm1, %v627_v33, 0 }
  0x9f   : > { %2598 = vmatmul.mubr.msk.bf16.vlgmr.msra.gmra.mxu0 %vm314_vm2, %v299_v27 }
  0xa0   : > { %540 = vmatpush1.bf16.msra.mxu0 %v517_v32  ;;  %557 = vmatprep.mubr.bf16.mxu0 %v2948_v1 }
  0xa1   : > { %2605 = vmatprep.subr.msk.bf16.mxu0 %vm318_vm1, %v630_v35  ;;  %v732_v38 = vpop.permute.xlu0 %731  ;;  %v734_v40 = vpop.permute.xlu1 %733 }
  0xa2   : > { %2717 = vmatmul.mubr.msk.bf16.vlgmr.msra.gmra.mxu1 %vm314_vm2, %v2600_v36  ;;  %v737_v43 = vsel %vm3540_vm6, %v732_v38, %v734_v40  ;;  %v748_v46 = vsel %vm318_vm1, %v734_v40, 0  ;;  %v736_v47 = vsel %vm3540_vm6, %v730_v34, %v732_v38  ;;  %vm1423_vm6 = vcmask 150672  }
  0xa3   : > { %2721 = vmatpush3.bf16.msra.mxu1 %v641_v37  ;;  %2722 = vmatprep.mubr.msk.bf16.mxu1 %vm2947_vm0, %v2946_v0  ;;  %v742_v49 = vsel %vm318_vm1, %v736_v47, 0 }
  0xa4   : > { %2726 = vmatprep.subr.bf16.mxu1 %v2946_v0 }
  0xa5   : > { %v837_v42 = vpop.permute.xlu0 %836  ;;  %v839_v45 = vpop.permute.xlu1 %838 }
  0xa6   : > { %v843_v55 = vsel %vm3539_vm7, %v837_v42, %v839_v45 }
  0xa7   : > { %2602 = vmatmul.mubr.msk.bf16.vlgmr.msra.gmra.mxu0 %vm314_vm2, %v2600_v36  ;;  %v849_v57 = vsel %vm318_vm1, %v843_v55, 0 }
  0xa8   : > { %658 = vmatpush1.bf16.msra.mxu0 %v635_v41  ;;  %675 = vmatprep.mubr.bf16.mxu0 %v2948_v1 }
  0xa9   : > { %2609 = vmatprep.subr.msk.bf16.mxu0 %vm318_vm1, %v737_v43  ;;  %v841_v48 = vpop.permute.xlu0 %840  ;;  %v955_v50 = vpop.permute.xlu1 %954 }
  0xaa   : > { %2723 = vmatmul.mubr.msk.bf16.vlgmr.msra.gmra.mxu1 %vm314_vm2, %v2604_v44  ;;  %v844_v51 = vsel %vm3539_vm7, %v839_v45, %v841_v48  ;;  %v855_v54 = vsel %vm318_vm1, %v841_v48, 0  ;;  %vm1425_vm7 = vcmask 699936  }
  0xab   : > { %2727 = vmatpush3.bf16.msra.mxu1 %v748_v46  ;;  %2728 = vmatprep.mubr.msk.bf16.mxu1 %vm2947_vm0, %v2946_v0 }
  0xac   : > { %2732 = vmatprep.subr.bf16.mxu1 %v2946_v0 }
  0xad   : > { %v957_v53 = vpop.permute.xlu0 %956  ;;  %v959_v56 = vpop.permute.xlu1 %958 }
  0xae   : > { %v962_v59 = vsel %vm3538_vm8, %v957_v53, %v959_v56  ;;  %v973_v62 = vsel %vm318_vm1, %v959_v56, 0  ;;  %v961_v63 = vsel %vm3538_vm8, %v955_v50, %v957_v53 }
  0xaf   : > { %2606 = vmatmul.mubr.msk.bf16.vlgmr.msra.gmra.mxu0 %vm314_vm2, %v2604_v44  ;;  %v967_v3 = vsel %vm318_vm1, %v961_v63, 0  ;;  %v225_v44 = vand.u32 127, %v224_v39 }
  0xb0   : > { %765 = vmatpush1.bf16.msra.mxu0 %v742_v49  ;;  %782 = vmatprep.mubr.bf16.mxu0 %v2948_v1 }
  0xb1   : > { %2613 = vmatprep.subr.msk.bf16.mxu0 %vm318_vm1, %v844_v51  ;;  %v1062_v58 = vpop.permute.xlu0 %1061  ;;  %v1064_v61 = vpop.permute.xlu1 %1063  ;;  %v227_v49 = vadd.s32 256, %v225_v44 }
  0xb2   : > { %2729 = vmatmul.mubr.msk.bf16.vlgmr.msra.gmra.mxu1 %vm314_vm2, %v2608_v52  ;;  %v1068_v8 = vsel %vm3535_vm9, %v1062_v58, %v1064_v61 }
  0xb3   : > { %2733 = vmatpush3.bf16.msra.mxu1 %v855_v54  ;;  %2734 = vmatprep.mubr.msk.bf16.mxu1 %vm2947_vm0, %v2946_v0  ;;  %v1074_v11 = vsel %vm318_vm1, %v1068_v8, 0  ;;  %v3241_v54 = vmul.u32.u64.low 3817748708, %v227_v49  ;;  %v3242_v55 = vmul.u32.u64.high 3817748708, %v227_v49, %v3241_v54 }
  0xb4   : > { %2738 = vmatprep.subr.bf16.mxu1 %v2946_v0 }
  0xb5   : > { %v1066_v2 = vpop.permute.xlu0 %1065  ;;  %v1169_v4 = vpop.permute.xlu1 %1168 }
  0xb6   : > { %v1069_v5 = vsel %vm3535_vm9, %v1064_v61, %v1066_v2  ;;  %v1080_v7 = vsel %vm318_vm1, %v1066_v2, 0 }
  0xb7   : > { %2610 = vmatmul.mubr.msk.bf16.vlgmr.msra.gmra.mxu0 %vm314_vm2, %v2608_v52 }
  0xb8   : > { %872 = vmatpush1.bf16.msra.mxu0 %v849_v57  ;;  %889 = vmatprep.mubr.bf16.mxu0 %v2948_v1 }
  0xb9   : > { %2617 = vmatprep.subr.msk.bf16.mxu0 %vm318_vm1, %v962_v59  ;;  %v1173_v9 = vpop.permute.xlu1 %1172  ;;  %v1171_v10 = vpop.permute.xlu0 %1170  ;;  %v226_v59 = vadd.s32 128, %v225_v44 }
  0xba   : > { %2735 = vmatmul.mubr.msk.bf16.vlgmr.msra.gmra.mxu1 %vm314_vm2, %v2612_v60  ;;  %v1176_v12 = vsel %vm3534_vm10, %v1171_v10, %v1173_v9  ;;  %v1187_v14 = vsel %vm318_vm1, %v1173_v9, 0  ;;  %v1175_v15 = vsel %vm3534_vm10, %v1169_v4, %v1171_v10 }
  0xbb   : > { %2739 = vmatpush3.bf16.msra.mxu1 %v973_v62  ;;  %2740 = vmatprep.mubr.msk.bf16.mxu1 %vm2947_vm0, %v2946_v0  ;;  %v1181_v16 = vsel %vm318_vm1, %v1175_v15, 0  ;;  %v3246_v62 = vmul.u32.u64.low 3817748708, %v225_v44  ;;  %v3247_v63 = vmul.u32.u64.high 3817748708, %v225_v44, %v3246_v62 }
  0xbc   : > { %2744 = vmatprep.subr.bf16.mxu1 %v2946_v0 }
  0xbf   : > { %2614 = vmatmul.mubr.msk.bf16.vlgmr.msra.gmra.mxu0 %vm314_vm2, %v2612_v60 }
  0xc0   : > { %990 = vmatpush1.bf16.msra.mxu0 %v967_v3  ;;  %1007 = vmatprep.mubr.bf16.mxu0 %v2948_v1 }
  0xc1   : > { %2621 = vmatprep.subr.msk.bf16.mxu0 %vm318_vm1, %v1069_v5  ;;  %v3249_v4 = vmul.u32.u64.low 3817748708, %v226_v59  ;;  %v3250_v5 = vmul.u32.u64.high 3817748708, %v226_v59, %v3249_v4 }
  0xc2   : > { %2741 = vmatmul.mubr.msk.bf16.vlgmr.msra.gmra.mxu1 %vm314_vm2, %v2616_v6 }
  0xc3   : > { %2745 = vmatpush3.bf16.msra.mxu1 %v1080_v7  ;;  %2746 = vmatprep.mubr.msk.bf16.mxu1 %vm2947_vm0, %v2946_v0  ;;  %v256_v7 = vshrl.u32 %v3242_v55, 4 }
  0xc4   : > { %2750 = vmatprep.subr.bf16.mxu1 %v2946_v0 }
  0xc6   : > { %v1277_v62 = vpop.permute.xlu0 %1276 }
  0xc7   : > { %2618 = vmatmul.mubr.msk.bf16.vlgmr.msra.gmra.mxu0 %vm314_vm2, %v2616_v6 }
  0xc8   : > { %1097 = vmatpush1.bf16.msra.mxu0 %v1074_v11  ;;  %1114 = vmatprep.mubr.bf16.mxu0 %v2948_v1 }
  0xc9   : > { %2625 = vmatprep.subr.msk.bf16.mxu0 %vm318_vm1, %v1176_v12  ;;  %v257_v12 = vmul.u32 18, %v256_v7 }
  0xca   : > { %2747 = vmatmul.mubr.msk.bf16.vlgmr.msra.gmra.mxu1 %vm314_vm2, %v2620_v13 }
  0xcb   : > { %2751 = vmatpush3.bf16.msra.mxu1 %v1187_v14  ;;  %2752 = vmatprep.mubr.msk.bf16.mxu1 %vm2947_vm0, %v2946_v0  ;;  %v234_v14 = vshrl.u32 %v3247_v63, 4 }
  0xcc   : > { %2756 = vmatprep.subr.bf16.mxu1 %v2946_v0 }
  0xcf   : > { %2622 = vmatmul.mubr.msk.bf16.vlgmr.msra.gmra.mxu0 %vm314_vm2, %v2620_v13 }
  0xd0   : > { %1204 = vmatpush1.bf16.msra.mxu0 %v1181_v16  ;;  %1221 = vmatprep.mubr.bf16.mxu0 %v2948_v1 }
  0xd2   : > { %2753 = vmatmul.mubr.msk.bf16.vlgmr.msra.gmra.mxu1 %vm314_vm2, %v2624_v17 }
  0xd3   : > { %2758 = vmatprep.mubr.msk.bf16.mxu1 %vm2947_vm0, %v2946_v0 }
  0xd7   : > { %2626 = vmatmul.mubr.msk.bf16.vlgmr.msra.gmra.mxu0 %vm314_vm2, %v2624_v17  ;;  %v245_v17 = vshrl.u32 %v3250_v5, 4 }
  0xd8   : > { %1507 = vmatprep.mubr.bf16.mxu0 %v2948_v1 }
 0x152   : > { %v3222_v18 = vpop.f32.mrf.mxu1 }
 0x154   : > { %v2706_v19 = vpop.f32.mrf.mxu1 }
 0x156   : > { %v406_v20 = vpop.f32.mrf.mxu1 }
 0x157   : > { %v3224_v21 = vpop.f32.mrf.mxu0  ;;  %v258_v20 = vsub.s32 %v227_v49, %v257_v12 }
 0x158   : > { %v2707_v22 = vpop.f32.mrf.mxu1 }
 0x159   : > { %v3226_v23 = vpop.f32.mrf.mxu0  ;;  %vm263_vm11 = vcmp.ne.s32.totalorder %v258_v20, 0  ;;  %vm266_vm12 = vcmp.lt.s32.totalorder %v258_v20, 0 }
 0x15a   : > { %v496_v24 = vpop.f32.mrf.mxu1  ;;  %vm269_vm13 = vmand %vm266_vm12, %vm263_vm11 }
 0x15b   : > { %v366_v25 = vpop.f32.mrf.mxu0  ;;  %v497_v22 = vadd.f32 %v496_v24, %v3222_v18 }
 0x15c   : > { %v2712_v26 = vpop.f32.mrf.mxu1 }
 0x15d   : > { %v367_v27 = vpop.f32.mrf.mxu0  ;;  %v235_v26 = vmul.u32 18, %v234_v14 }
 0x15e   : > { %v499_v28 = vpop.f32.mrf.mxu1 }
 0x15f   : > { %v3228_v29 = vpop.f32.mrf.mxu0 }
 0x160   : > { %v2713_v30 = vpop.f32.mrf.mxu1 }
 0x161   : > { %v3230_v31 = vpop.f32.mrf.mxu0 }
 0x162   : > { %v600_v32 = vpop.f32.mrf.mxu1  ;;  %v458_v24 = vadd.f32 %v3230_v31, %v3226_v23 }
 0x163   : > { %v459_v33 = vpop.f32.mrf.mxu0  ;;  %v608_v28 = vadd.f32 %v600_v32, %v497_v22 }
 0x164   : > { %v2718_v34 = vpop.f32.mrf.mxu1  ;;  %v246_v33 = vmul.u32 18, %v245_v17 }
 0x165   : > { %v460_v35 = vpop.f32.mrf.mxu0 }
 0x166   : > { %v603_v36 = vpop.f32.mrf.mxu1  ;;  %v247_v18 = vsub.s32 %v226_v59, %v246_v33 }
 0x167   : > { %v3232_v37 = vpop.f32.mrf.mxu0 }
 0x168   : > { %v2719_v38 = vpop.f32.mrf.mxu1  ;;  %vm262_vm11 = vcmp.ne.s32.totalorder %v247_v18, 0  ;;  %vm265_vm12 = vcmp.lt.s32.totalorder %v247_v18, 0 }
 0x169   : > { %v3234_v40 = vpop.f32.mrf.mxu0  ;;  %v236_v38 = vsub.s32 %v225_v44, %v235_v26 }
 0x16a   : > { %v718_v41 = vpop.f32.mrf.mxu1 }
 0x16b   : > { %v563_v42 = vpop.f32.mrf.mxu0  ;;  %v726_v35 = vadd.f32 %v718_v41, %v608_v28  ;;  %vm261_vm14 = vcmp.ne.s32.totalorder %v236_v38, 0  ;;  %vm264_vm15 = vcmp.lt.s32.totalorder %v236_v38, 0  ;;  %v607_v41 = vadd.f32 %v3234_v40, %v458_v24 }
 0x16c   : > { %v2724_v43 = vpop.f32.mrf.mxu1  ;;  %v456_v42 = vadd.f32 %v3228_v29, %v3224_v21  ;;  %v270_v55 = vadd.s32 18, %v236_v38  ;;  %vm267_vm10 = vmand %vm264_vm15, %vm261_vm14  ;;  %v271_v40 = vadd.s32 18, %v247_v18  ;;  %vm3537_vm14 = vcmask 257024  }
 0x16d   : > { %v564_v45 = vpop.f32.mrf.mxu0 }
 0x16e   : > { %v721_v46 = vpop.f32.mrf.mxu1  ;;  %v272_v45 = vadd.s32 18, %v258_v20  ;;  %v606_v32 = vadd.f32 %v3232_v37, %v456_v42 }
 0x16f   : > { %v3237_v47 = vpop.f32.mrf.mxu0 }
 0x170   : > { %v2725_v48 = vpop.f32.mrf.mxu1  ;;  %v724_v21 = vadd.f32 %v3237_v47, %v606_v32  ;;  %v3263_v44 = vsel %vm269_vm13, %v272_v45, %v258_v20  ;;  %vm268_vm13 = vmand %vm265_vm12, %vm262_vm11  ;;  %vm1357_vm11 = vcmask 15360  }
 0x171   : > { %v3239_v50 = vpop.f32.mrf.mxu0  ;;  %vm278_vm9 = vcmp.lt.s32.totalorder %v3263_v44, 16  ;;  %vm287_vm8 = vcmp.eq.s32.totalorder %v3263_v44, 16 }
 0x172   : > { %v825_v51 = vpop.f32.mrf.mxu1  ;;  %v725_v23 = vadd.f32 %v3239_v50, %v607_v41 }
 0x173   : > { %v681_v52 = vpop.f32.mrf.mxu0  ;;  %v833_v46 = vadd.f32 %v825_v51, %v726_v35 }
 0x174   : > { %v2730_v53 = vpop.f32.mrf.mxu1 }
 0x175   : > { %v682_v56 = vpop.f32.mrf.mxu0 }
 0x176   : > { %v828_v57 = vpop.f32.mrf.mxu1 }
 0x177   : > { %v784_v58 = vpop.f32.mrf.mxu0 }
 0x178   : > { %v2731_v60 = vpop.f32.mrf.mxu1  ;;  %v831_v31 = vadd.f32 %v784_v58, %v724_v21  ;;  %v3271_v58 = vsel %vm278_vm9, 1.0, %v2946_v0  ;;  %vm3536_vm9 = vcmask 1043456  }
 0x179   : > { %v3244_v61 = vpop.f32.mrf.mxu0 }
 0x17a   : > { %v932_v2 = vpop.f32.mrf.mxu1  ;;  %v832_v47 = vadd.f32 %v3244_v61, %v725_v23 }
 0x17b   : > { %v788_v3 = vpop.f32.mrf.mxu0  ;;  %v940_v52 = vadd.f32 %v932_v2, %v833_v46 }
 0x17c   : > { %v2736_v6 = vpop.f32.mrf.mxu1  ;;  %v3268_v3 = vsel %vm267_vm10, %v270_v55, %v236_v38  ;;  %v2957_v55 = vmov 839922192  }
 0x17d   : > { %v789_v8 = vpop.f32.mrf.mxu0  ;;  %vm276_vm15 = vcmp.lt.s32.totalorder %v3268_v3, 16  ;;  %v1323_v23 = vunpack.c.l.s4 %v2957_v55  ;;  %vm288_vm12 = vcmp.eq.s32.totalorder %v3268_v3, 17 }
 0x17e   : > { %v935_v9 = vpop.f32.mrf.mxu1  ;;  %v3273_v8 = vsel %vm268_vm13, %v271_v40, %v247_v18 }
 0x17f   : > { %v891_v10 = vpop.f32.mrf.mxu0  ;;  %vm277_vm10 = vcmp.lt.s32.totalorder %v3273_v8, 16  ;;  %vm289_vm13 = vcmp.eq.s32.totalorder %v3273_v8, 17 }
 0x180   : > { %v2737_v11 = vpop.f32.mrf.mxu1  ;;  %v938_v59 = vadd.f32 %v891_v10, %v831_v31  ;;  %v3283_v22 = vsel %vm277_vm10, 1.0, %v2946_v0  ;;  %vm1379_vm10 = vcmask 244736  }
 0x181   : > { %v893_v13 = vpop.f32.mrf.mxu0 }
 0x182   : > { %v1050_v15 = vpop.f32.mrf.mxu1  ;;  %v939_v4 = vadd.f32 %v893_v13, %v832_v47 }
 0x183   : > { %v895_v16 = vpop.f32.mrf.mxu0  ;;  %v1058_v51 = vadd.f32 %v1050_v15, %v940_v52 }
 0x184   : > { %v2742_v19 = vpop.f32.mrf.mxu1  ;;  %v3280_v16 = vsel %vm276_vm15, 1.0, %v2946_v0  ;;  %vm285_vm15 = vcmp.eq.s32.totalorder %v3268_v3, 16 }
 0x185   : > { %v896_v25 = vpop.f32.mrf.mxu0 }
 0x186   : > { %v1053_v27 = vpop.f32.mrf.mxu1 }
 0x187   : > { %v1009_v30 = vpop.f32.mrf.mxu0 }
 0x188   : > { %v2743_v34 = vpop.f32.mrf.mxu1  ;;  %v1056_v50 = vadd.f32 %v1009_v30, %v938_v59 }
 0x189   : > { %v1011_v36 = vpop.f32.mrf.mxu0 }
 0x18a   : > { %v1157_v43 = vpop.f32.mrf.mxu1  ;;  %v1057_v9 = vadd.f32 %v1011_v36, %v939_v4 }
 0x18b   : > { %v1013_v48 = vpop.f32.mrf.mxu0  ;;  %v1165_v56 = vadd.f32 %v1157_v43, %v1058_v51 }
 0x18c   : > { %v2748_v49 = vpop.f32.mrf.mxu1 }
 0x18d   : > { %v1014_v53 = vpop.f32.mrf.mxu0 }
 0x18e   : > { %v1160_v29 = vpop.f32.mrf.mxu1 }
 0x18f   : > { %v1116_v54 = vpop.f32.mrf.mxu0 }
 0x190   : > { %v2749_v37 = vpop.f32.mrf.mxu1  ;;  %v1163_v61 = vadd.f32 %v1116_v54, %v1056_v50 }
 0x191   : > { %v1118_v57 = vpop.f32.mrf.mxu0  ;;  %v1324_v37 = vunpack.c.0.s8 %v1323_v23 }
 0x192   : > { %v1264_v60 = vpop.f32.mrf.mxu1  ;;  %v1164_v14 = vadd.f32 %v1118_v57, %v1057_v9 }
 0x193   : > { %v1272_v63 = vadd.f32 %v1264_v60, %v1165_v56  ;;  %v1120_v2 = vpop.f32.mrf.mxu0  ;;  %v1326_v56 = vshrl.u32 %v224_v39, 7 }
 0x194   : > { %v2754_v5 = vpop.f32.mrf.mxu1 }
 0x195   : > { %v1281_v6 = vadd.f32 %v1277_v62, %v1272_v63  ;;  %v1121_v7 = vpop.f32.mrf.mxu0  ;;  %v3294_v57 = vsub.s32 %v1324_v37, %v1326_v56 }
 0x196   : > { %v1267_v10 = vpop.f32.mrf.mxu1 }
 0x197   : > { %v1284_v11 = vmul.f32 %v3271_v58, %v1281_v6  ;;  %v1223_v12 = vpop.f32.mrf.mxu0 }
 0x198   : > { %v1270_v13 = vadd.f32 %v1223_v12, %v1163_v61  ;;  %v2755_v15 = vpop.f32.mrf.mxu1 }
 0x199   : > { %1291 = vst.msk [vmem:[#allocation2 + $0x8] sm:$0xf] %vm3537_vm14, %v1284_v11  ;;  %v1225_v17 = vpop.f32.mrf.mxu0  ;;  %v1303_v34 = vmul.f32 %v1284_v11, %v1284_v11  ;;  %v1296_v45 = vsel %vm3537_vm14, %v1284_v11, 0.0 }
 0x19a   : > { %v1279_v19 = vadd.f32 %v1277_v62, %v1270_v13  ;;  %v1271_v20 = vadd.f32 %v1225_v17, %v1164_v14 }
 0x19b   : > { %v1227_v25 = vpop.f32.mrf.mxu0  ;;  %v1307_v32 = vsel %vm3537_vm14, %v1303_v34, 0.0  ;;  %vm290_vm14 = vcmp.eq.s32.totalorder %v3263_v44, 17 }
 0x19c   : > { %v1282_v26 = vmul.f32 %v3280_v16, %v1279_v19  ;;  %v1280_v27 = vadd.f32 %v1277_v62, %v1271_v20 }
 0x19d   : > { %v1228_v28 = vpop.f32.mrf.mxu0 }
 0x19e   : > { %v1283_v30 = vmul.f32 %v3283_v22, %v1280_v27  ;;  %v1301_v33 = vmul.f32 %v1282_v26, %v1282_v26  ;;  %v1293_v36 = vsel %vm3536_vm9, %v1282_v26, 0.0 }
 0x1a0   : > { %v1287_v35 = vcombine.low %v1282_v26, %v1283_v30  ;;  %v1294_v38 = vsel %vm3536_vm9, %v1283_v30, 0.0  ;;  %v1302_v42 = vmul.f32 %v1283_v30, %v1283_v30  ;;  %v1304_v46 = vsel %vm3536_vm9, %v1301_v33, 0.0  ;;  %v1320_v62 = vld [vmem:[#allocation2 + $0x8] sm:$0xf] }
 0x1a1   : > { %v1295_v43 = vadd.f32 %v1294_v38, %v1293_v36 }
 0x1a2   : > { %v1305_v48 = vsel %vm3536_vm9, %v1302_v42, 0.0  ;;  %vm286_vm9 = vcmp.eq.s32.totalorder %v3273_v8, 16 }
 0x1a3   : > { %v1297_v18 = vadd.f32 %v1296_v45, %v1295_v43  ;;  %v1306_v24 = vadd.f32 %v1305_v48, %v1304_v46 }
 0x1a5   : > { %1298 = vadd.xlane.f32.xlu1 %v1297_v18  ;;  %v1308_v49 = vadd.f32 %v1307_v32, %v1306_v24 }
 0x1a7   : > { %1309 = vadd.xlane.f32.xlu0 %v1308_v49 }
 0x22e   : > { %v1299_v52 = vpop.xlane.xlu1 %1298 }
 0x22f   : > { %v1312_v53 = vmul.f32 0.00390625, %v1299_v52 }
 0x230   : > { %v1310_v41 = vpop.xlane.xlu0 %1309 }
 0x231   : > { %v1314_v21 = vmul.f32 %v1312_v53, %v1312_v53  ;;  %v1313_v29 = vmul.f32 0.00390625, %v1310_v41  ;;  %v1328_v40 = vrot.slane %v1312_v53, %v3294_v57 }
 0x233   : > { %v1315_v51 = vsub.f32 %v1313_v29, %v1314_v21  ;;  %v1330_v59 = vsub.f32 %v1287_v35, %v1328_v40  ;;  %v1331_v63 = vsub.f32 %v1320_v62, %v1328_v40 }
 0x235   : > { %v1316_v54 = vmax.f32 %v1315_v51, 0.0 }
 0x237   : > { %v1317_v31 = vadd.f32 1e-05, %v1316_v54  ;;  %v2413_v54 = vld [vmem:[%s3532_s4] sm:$0xf] }
 0x239   : > { %2880 = vrsqrt.f32 %v1317_v31 }
 0x246   : > { %v2881_v47 = vpop.eup %2880 }
 0x247   : > { %v1339_v60 = vrot.slane %v2881_v47, %v3294_v57 }
 0x249   : > { %v1341_v2 = vmul.f32 %v1339_v60, %v1330_v59  ;;  %v1342_v50 = vmul.f32 %v1339_v60, %v1331_v63  ;;  %v2628_v60 = vld [vmem:[%s3531_s3 + $0x2] sm:$0x3] }
 0x24b   : > { %v1343_v4 = vmax.f32 %v1341_v2, 0.0  ;;  %v1344_v6 = vmax.f32 %v1342_v50, 0.0 }
 0x24d   : > { %1364 = vrot.lane.b32.xlu1 %v1343_v4, %s2950_s11  ;;  %v1350_v5 = vcombine.high %v1343_v4, %v1343_v4 }
 0x24f   : > { %1366 = vrot.lane.b32.xlu0 %v1350_v5, %s2950_s11 }
 0x251   : > { %1368 = vrot.lane.b32.xlu1 %v1344_v6, %s2950_s11 }
 0x253   : > { %1351 = vrot.lane.b32.xlu0 %v1343_v4, %s2958_s8 }
 0x255   : > { %1346 = vrot.lane.b32.xlu1 %v1344_v6, %s2959_s23  ;;  %s2818_s23 = smul.u32 192, %s3016_s22  ;;  %s2512_s22 = scalar_lea.sflag [#allocation5], %s215_s7 }
 0x257   : > { %1376 = vrot.lane.b32.xlu0 %v1343_v4, %s2960_s25 }
 0x259   : > { %1353 = vrot.lane.b32.xlu1 %v1350_v5, %s2958_s8 }
 0x25d   : > { %1355 = vrot.lane.b32.xlu1 %v1344_v6, %s2958_s8  ;;  %s2810_s8 = smul.u32 12, %s215_s7 }
 0x2bf   : > { %v1365_v39 = vpop.permute.xlu1 %1364 }
 0x2c1   : > { %v1367_v7 = vpop.permute.xlu0 %1366 }
 0x2c2   : > { %v1371_v11 = vsel %vm510_vm4, %v1365_v39, %v1367_v7  ;;  %v1449_v39 = vld [vmem:[%s3531_s3] sm:$0x3] }
 0x2c3   : > { %v1369_v9 = vpop.permute.xlu1 %1368  ;;  %v1388_v17 = vsel %vm288_vm12, %v1371_v11, %v1343_v4  ;;  %vm1414_vm12 = vcmask 1043608  }
 0x2c4   : > { %v1372_v12 = vsel %vm510_vm4, %v1367_v7, %v1369_v9 }
 0x2c5   : > { %v1352_v61 = vpop.permute.xlu0 %1351  ;;  %v1389_v19 = vsel %vm289_vm13, %v1372_v12, %v1350_v5  ;;  %vm1415_vm13 = vcmask 1047556  }
 0x2c7   : > { %v1347_v10 = vpop.permute.xlu1 %1346 }
 0x2c8   : > { %v1363_v14 = vsel %vm1357_vm11, %v1347_v10, %v1352_v61 }
 0x2c9   : > { %v1377_v13 = vpop.permute.xlu0 %1376  ;;  %v1397_v25 = vsel %vm285_vm15, %v1363_v14, %v1388_v17  ;;  %vm1416_vm15 = vmor %vm1415_vm13, %vm1414_vm12  ;;  %vm3549_vm12 = vcmask 744448  }
 0x2ca   : > { %v1380_v26 = vsel %vm1379_vm10, %v1369_v9, %v1377_v13  ;;  %vm1418_vm10 = vcmask 412672   ;;  %vm3550_vm13 = vmmov %vm3549_vm12 }
 0x2cb   : > { %v1354_v15 = vpop.permute.xlu1 %1353  ;;  %v1390_v8 = vsel %vm290_vm14, %v1380_v26, %v1344_v6  ;;  %vm1439_vm14 = vcmask 552336  }
 0x2cc   : > { %v1358_v20 = vsel %vm1357_vm11, %v1352_v61, %v1354_v15 }
 0x2cd   : > { %v1398_v27 = vsel %vm286_vm9, %v1358_v20, %v1389_v19  ;;  %vm1409_vm9 = vcmask 154624  }
 0x2ce   : > { %v1403_v28 = vcombine.low %v1397_v25, %v1398_v27 }
 0x2cf   : > { %v1356_v3 = vpop.permute.xlu1 %1355 }
 0x2d0   : > { %v1359_v30 = vsel %vm1357_vm11, %v1354_v15, %v1356_v3  ;;  %1404 = vrot.lane.b32.xlu0 %v1403_v28, %s2961_s26  ;;  %v2635_v15 = vld [vmem:[%s3531_s3 + $0x4] sm:$0x3]  ;;  %v2639_v3 = vld [vmem:[%s3531_s3 + $0x6] sm:$0x3] }
 0x2d1   : > { %v1399_v33 = vsel %vm287_vm8, %v1359_v30, %v1390_v8  ;;  %vm1432_vm8 = vcmask 142336  }
 0x2d2   : > { %1406 = vrot.lane.b32.xlu1 %v1399_v33, %s2961_s26 }
 0x2d4   : > { %1420 = vrot.lane.b32.xlu0 %v1343_v4, %s2962_s30 }
 0x342   : > { %v1405_v34 = vpop.permute.xlu0 %1404 }
 0x343   : > { %v1408_v35 = vrot.slane %v1405_v34, 4 }
 0x344   : > { %v1407_v44 = vpop.permute.xlu1 %1406 }
 0x345   : > { %v1410_v36 = vsel %vm1409_vm9, %v1408_v35, %v1405_v34  ;;  %v1411_v38 = vsel %vm1409_vm9, %v1408_v35, %v1407_v44 }
 0x346   : > { %1417 = vst.msk [vmem:[#allocation3] sm:$0xff] %vm1416_vm15, %v1410_v36  ;;  %v1421_v42 = vpop.permute.xlu0 %1420  ;;  %vm3551_vm15 = vcmask 736256  }
 0x347   : > { %1419 = vst.msk [vmem:[#allocation3 + $0x8] sm:$0xf] %vm1418_vm10, %v1411_v38  ;;  %v2643_v38 = vld [vmem:[%s3531_s3 + $0x8] sm:$0x3]  ;;  %vm3552_vm10 = vmmov %vm3551_vm15 }
 0x348   : > { %1426 = vst.msk [vmem:[#allocation3 + $0x8] sm:$0xf] %vm1425_vm7, %v2946_v0  ;;  %vm3547_vm7 = vcmask 752640  }
 0x349   : > { %1424 = vst.msk [vmem:[#allocation3] sm:$0xf] %vm1423_vm6, %v1421_v42  ;;  %vm3548_vm11 = vmmov %vm3547_vm7 }
 0x34f   : > { %v1434_v45 = vld [vmem:[#allocation3 + $0x8] sm:$0xf] }
 0x350   : > { %v1427_v43 = vld [vmem:[#allocation3] sm:$0xf]  ;;  %1436 = vrot.lane.b32.xlu0 %v1434_v45, %s2963_s6  ;;  %s3492_s6 = scalar_lea.hbm %s3533_s5, %s2818_s23 }
 0x351   : > { %1429 = vrot.lane.b32.xlu1 %v1427_v43, %s2954_s15 }
 0x3c2   : > { %v1437_v48 = vpop.permute.xlu0 %1436 }
 0x3c3   : > { %v1430_v46 = vpop.permute.xlu1 %1429  ;;  %1440 = vst.msk [vmem:[#allocation3 + $0x8] sm:$0xf] %vm1439_vm14, %v1437_v48 }
 0x3c4   : > { %1433 = vst.msk [vmem:[#allocation3] sm:$0xf] %vm1432_vm8, %v1430_v46 }
 0x3ca   : > { %v1442_v24 = vld [vmem:[#allocation3 + $0x8] sm:$0xf] }
 0x3cb   : > { %v1441_v18 = vld [vmem:[#allocation3] sm:$0xff]  ;;  %v1448_v53 = vpack.c.bf16 %v1442_v24, %v1442_v24  ;;  %v1756_v41 = vld [vmem:[#allocation3 + $0x8] sm:$0xf]  ;;  %v2647_v24 = vld [vmem:[%s3531_s3 + $0xa] sm:$0x3] }
 0x3cc   : > { %v1446_v32 = vpack.c.bf16 %v1441_v18, %v1441_v18  ;;  %v1444_v49 = vcombine.high %v1441_v18, %v1441_v18  ;;  %v1762_v21 = vpack.c.bf16 %v1756_v41, %v1756_v41  ;;  %v2085_v29 = vld [vmem:[#allocation3 + $0x8] sm:$0xf] }
 0x3cd   : > { %v2091_v51 = vpack.c.bf16 %v2085_v29, %v2085_v29  ;;  %v1566_v63 = vsel %vm318_vm1, %v1448_v53, 0  ;;  %v2651_v29 = vld [vmem:[%s3531_s3 + $0xc] sm:$0x3] }
 0x3ce   : > { %1455 = vrot.lane.b32.xlu1 %v1446_v32, %s2949_s10  ;;  %v1447_v52 = vpack.c.bf16 %v1444_v49, %v1444_v49  ;;  %v1560_v4 = vsel %vm318_vm1, %v1446_v32, 0 }
 0x3d0   : > { %1457 = vrot.lane.b32.xlu0 %v1447_v52, %s2949_s10 }
 0x3d2   : > { %1459 = vrot.lane.b32.xlu1 %v1448_v53, %s2949_s10  ;;  %s2964_s10 = smov [#allocation4]  }
 0x3d4   : > { %1651 = vrot.lane.b32.xlu0 %v1446_v32, %s2950_s11 }
 0x3d6   : > { %1653 = vrot.lane.b32.xlu1 %v1447_v52, %s2950_s11 }
 0x3d8   : > { %1655 = vrot.lane.b32.xlu0 %v1448_v53, %s2950_s11  ;;  %s2888_s11 = sshll.u32 %s2964_s10, 4  ;;  %s2889_s11 = int_to_ptr.vmem [resolvable:$false] %s2888_s11 }
 0x3da   : > { %1768 = vrot.lane.b32.xlu1 %v1446_v32, %s2951_s12 }
 0x3dc   : > { %1770 = vrot.lane.b32.xlu0 %v1447_v52, %s2951_s12 }
 0x3de   : > { %1772 = vrot.lane.b32.xlu1 %v1762_v21, %s2951_s12  ;;  %s2890_s12 = scalar_lea.vmem %s2889_s11, 384 }
 0x3e0   : > { %1874 = vrot.lane.b32.xlu0 %v1446_v32, %s2952_s13 }
 0x3e2   : > { %1876 = vrot.lane.b32.xlu1 %v1447_v52, %s2952_s13 }
 0x3e4   : > { %1878 = vrot.lane.b32.xlu0 %v1762_v21, %s2952_s13 }
 0x3e6   : > { %1980 = vrot.lane.b32.xlu1 %v1446_v32, %s2953_s14 }
 0x3e8   : > { %1982 = vrot.lane.b32.xlu0 %v1447_v52, %s2953_s14 }
 0x3ea   : > { %1984 = vrot.lane.b32.xlu1 %v1762_v21, %s2953_s14 }
 0x3ec   : > { %2097 = vrot.lane.b32.xlu0 %v1446_v32, %s2954_s15 }
 0x3ee   : > { %2099 = vrot.lane.b32.xlu1 %v1447_v52, %s2954_s15 }
 0x3f0   : > { %2101 = vrot.lane.b32.xlu0 %v2091_v51, %s2954_s15 }
 0x3f2   : > { %2203 = vrot.lane.b32.xlu1 %v1446_v32, %s2955_s16 }
 0x3f4   : > { %2205 = vrot.lane.b32.xlu0 %v1447_v52, %s2955_s16 }
 0x3f6   : > { %2207 = vrot.lane.b32.xlu1 %v2091_v51, %s2955_s16 }
 0x3f8   : > { %2309 = vrot.lane.b32.xlu0 %v1446_v32, %s2956_s17 }
 0x3fa   : > { %2311 = vrot.lane.b32.xlu1 %v1447_v52, %s2956_s17 }
 0x3fc   : > { %2313 = vrot.lane.b32.xlu0 %v2091_v51, %s2956_s17 }
 0x3fe   : > { %2416 = vperm.xlu1 %2877, %v2413_v54  }
 0x440   : > { %v1456_v55 = vpop.permute.xlu1 %1455 }
 0x442   : > { %v1458_v23 = vpop.permute.xlu0 %1457 }
 0x443   : > { %v1461_v31 = vsel %vm311_vm3, %v1456_v55, %v1458_v23 }
 0x444   : > { %v1460_v37 = vpop.permute.xlu1 %1459  ;;  %v1467_v47 = vsel %vm318_vm1, %v1461_v31, 0 }
 0x445   : > { %v1462_v56 = vsel %vm311_vm3, %v1458_v23, %v1460_v37  ;;  %v1473_v40 = vsel %vm318_vm1, %v1460_v37, 0  ;;  %vm3543_vm3 = vcmask 891904  }
 0x446   : > { %2629 = vmatprep.subr.msk.bf16.mxu0 %vm318_vm1, %v1462_v56  ;;  %2757 = vmatpush3.bf16.msra.mxu1 %v1473_v40  ;;  %v1652_v59 = vpop.permute.xlu0 %1651  ;;  %v2655_v56 = vld [vmem:[%s3531_s3 + $0xe] sm:$0x3] }
 0x447   : > { %1490 = vmatpush1.bf16.msra.mxu0 %v1467_v47  ;;  %2762 = vmatprep.subr.bf16.mxu1 %v2946_v0 }
 0x448   : > { %v1654_v62 = vpop.permute.xlu1 %1653  ;;  %2632 = vmatprep.subr.msk.bf16.mxu0 %vm318_vm1, %v1447_v52 }
 0x449   : > { %2759 = vmatmul.mubr.msk.bf16.vlgmr.msra.gmra.mxu1 %vm314_vm2, %v2628_v60  ;;  %v1657_v7 = vsel %vm510_vm4, %v1652_v59, %v1654_v62 }
 0x44a   : > { %2630 = vmatmul.mubr.msk.bf16.vlgmr.msra.gmra.mxu0 %vm314_vm2, %v2628_v60  ;;  %2763 = vmatpush3.bf16.msra.mxu1 %v1566_v63  ;;  %v1656_v2 = vpop.permute.xlu0 %1655  ;;  %v1663_v11 = vsel %vm318_vm1, %v1657_v7, 0  ;;  %v2659_v60 = vld [vmem:[%s3531_s3 + $0x10] sm:$0x3] }
 0x44b   : > { %v1658_v50 = vsel %vm510_vm4, %v1654_v62, %v1656_v2  ;;  %1583 = vmatpush1.bf16.msra.mxu0 %v1560_v4  ;;  %2764 = vmatprep.mubr.msk.bf16.mxu1 %vm2947_vm0, %v2946_v0  ;;  %v1669_v61 = vsel %vm318_vm1, %v1656_v2, 0  ;;  %vm3544_vm4 = vmmov %vm3543_vm3 }
 0x44c   : > { %v1769_v5 = vpop.permute.xlu1 %1768  ;;  %2636 = vmatprep.subr.msk.bf16.mxu0 %vm318_vm1, %v1658_v50  ;;  %2768 = vmatprep.subr.bf16.mxu1 %v2946_v0 }
 0x44d   : > { %1600 = vmatprep.mubr.bf16.mxu0 %v2948_v1 }
 0x44e   : > { %v1771_v6 = vpop.permute.xlu0 %1770 }
 0x44f   : > { %v1774_v17 = vsel %vm628_vm5, %v1769_v5, %v1771_v6 }
 0x450   : > { %v1773_v9 = vpop.permute.xlu1 %1772  ;;  %v1780_v25 = vsel %vm318_vm1, %v1774_v17, 0 }
 0x451   : > { %v1775_v10 = vsel %vm628_vm5, %v1771_v6, %v1773_v9  ;;  %2765 = vmatmul.mubr.msk.bf16.vlgmr.msra.gmra.mxu1 %vm314_vm2, %v1449_v39  ;;  %v1786_v20 = vsel %vm318_vm1, %v1773_v9, 0  ;;  %vm3545_vm5 = vcmask 883712  }
 0x452   : > { %2769 = vmatpush3.bf16.msra.mxu1 %v1669_v61  ;;  %2633 = vmatmul.mubr.msk.bf16.vlgmr.msra.gmra.mxu0 %vm314_vm2, %v1449_v39  ;;  %v1875_v12 = vpop.permute.xlu0 %1874  ;;  %vm3546_vm6 = vmmov %vm3545_vm5 }
 0x453   : > { %1686 = vmatpush1.bf16.msra.mxu0 %v1663_v11  ;;  %2770 = vmatprep.mubr.msk.bf16.mxu1 %vm2947_vm0, %v2946_v0 }
 0x454   : > { %2640 = vmatprep.subr.msk.bf16.mxu0 %vm318_vm1, %v1775_v10  ;;  %v1877_v14 = vpop.permute.xlu1 %1876  ;;  %2774 = vmatprep.subr.bf16.mxu1 %v2946_v0 }
 0x455   : > { %1703 = vmatprep.mubr.bf16.mxu0 %v2948_v1  ;;  %v1880_v30 = vsel %vm3544_vm4, %v1875_v12, %v1877_v14 }
 0x456   : > { %v1879_v13 = vpop.permute.xlu0 %1878  ;;  %v1886_v34 = vsel %vm318_vm1, %v1880_v30, 0 }
 0x457   : > { %v1881_v27 = vsel %vm3543_vm3, %v1877_v14, %v1879_v13  ;;  %v1892_v33 = vsel %vm318_vm1, %v1879_v13, 0 }
 0x458   : > { %v1981_v19 = vpop.permute.xlu1 %1980 }
 0x459   : > { %2771 = vmatmul.mubr.msk.bf16.vlgmr.msra.gmra.mxu1 %vm314_vm2, %v2635_v15 }
 0x45a   : > { %2775 = vmatpush3.bf16.msra.mxu1 %v1786_v20  ;;  %2637 = vmatmul.mubr.msk.bf16.vlgmr.msra.gmra.mxu0 %vm314_vm2, %v2635_v15  ;;  %v1983_v26 = vpop.permute.xlu0 %1982 }
 0x45b   : > { %1803 = vmatpush1.bf16.msra.mxu0 %v1780_v25  ;;  %2776 = vmatprep.mubr.msk.bf16.mxu1 %vm2947_vm0, %v2946_v0  ;;  %v1986_v42 = vsel %vm3546_vm6, %v1981_v19, %v1983_v26 }
 0x45c   : > { %2644 = vmatprep.subr.msk.bf16.mxu0 %vm318_vm1, %v1881_v27  ;;  %2780 = vmatprep.subr.bf16.mxu1 %v2946_v0  ;;  %v1985_v28 = vpop.permute.xlu1 %1984  ;;  %v1992_v45 = vsel %vm318_vm1, %v1986_v42, 0 }
 0x45d   : > { %1820 = vmatprep.mubr.bf16.mxu0 %v2948_v1  ;;  %v1987_v35 = vsel %vm3545_vm5, %v1983_v26, %v1985_v28  ;;  %v1998_v43 = vsel %vm318_vm1, %v1985_v28, 0 }
 0x45e   : > { %v2098_v8 = vpop.permute.xlu0 %2097 }
 0x460   : > { %v2100_v44 = vpop.permute.xlu1 %2099 }
 0x461   : > { %2777 = vmatmul.mubr.msk.bf16.vlgmr.msra.gmra.mxu1 %vm314_vm2, %v2639_v3  ;;  %v2103_v32 = vsel %vm3548_vm11, %v2098_v8, %v2100_v44 }
 0x462   : > { %2781 = vmatpush3.bf16.msra.mxu1 %v1892_v33  ;;  %2641 = vmatmul.mubr.msk.bf16.vlgmr.msra.gmra.mxu0 %vm314_vm2, %v2639_v3  ;;  %v2102_v36 = vpop.permute.xlu0 %2101  ;;  %v2109_v53 = vsel %vm318_vm1, %v2103_v32, 0 }
 0x463   : > { %1909 = vmatpush1.bf16.msra.mxu0 %v1886_v34  ;;  %2782 = vmatprep.mubr.msk.bf16.mxu1 %vm2947_vm0, %v2946_v0  ;;  %v2104_v48 = vsel %vm3547_vm7, %v2100_v44, %v2102_v36  ;;  %v2115_v52 = vsel %vm318_vm1, %v2102_v36, 0 }
 0x464   : > { %2648 = vmatprep.subr.msk.bf16.mxu0 %vm318_vm1, %v1987_v35  ;;  %2786 = vmatprep.subr.bf16.mxu1 %v2946_v0  ;;  %v2204_v46 = vpop.permute.xlu1 %2203 }
 0x465   : > { %1926 = vmatprep.mubr.bf16.mxu0 %v2948_v1 }
 0x466   : > { %v2206_v18 = vpop.permute.xlu0 %2205 }
 0x467   : > { %v2209_v51 = vsel %vm3550_vm13, %v2204_v46, %v2206_v18 }
 0x468   : > { %v2208_v49 = vpop.permute.xlu1 %2207  ;;  %v2215_v23 = vsel %vm318_vm1, %v2209_v51, 0 }
 0x469   : > { %2783 = vmatmul.mubr.msk.bf16.vlgmr.msra.gmra.mxu1 %vm314_vm2, %v2643_v38  ;;  %v2210_v21 = vsel %vm3549_vm12, %v2206_v18, %v2208_v49  ;;  %v2221_v55 = vsel %vm318_vm1, %v2208_v49, 0 }
 0x46a   : > { %2787 = vmatpush3.bf16.msra.mxu1 %v1998_v43  ;;  %2645 = vmatmul.mubr.msk.bf16.vlgmr.msra.gmra.mxu0 %vm314_vm2, %v2643_v38  ;;  %v2310_v41 = vpop.permute.xlu0 %2309 }
 0x46b   : > { %2015 = vmatpush1.bf16.msra.mxu0 %v1992_v45  ;;  %2788 = vmatprep.mubr.msk.bf16.mxu1 %vm2947_vm0, %v2946_v0 }
 0x46c   : > { %2652 = vmatprep.subr.msk.bf16.mxu0 %vm318_vm1, %v2104_v48  ;;  %2792 = vmatprep.subr.bf16.mxu1 %v2946_v0  ;;  %v2312_v31 = vpop.permute.xlu1 %2311 }
 0x46d   : > { %2032 = vmatprep.mubr.bf16.mxu0 %v2948_v1  ;;  %v2315_v40 = vsel %vm3552_vm10, %v2310_v41, %v2312_v31 }
 0x46e   : > { %v2314_v54 = vpop.permute.xlu0 %2313  ;;  %v2321_v59 = vsel %vm318_vm1, %v2315_v40, 0 }
 0x46f   : > { %v2316_v37 = vsel %vm3551_vm15, %v2312_v31, %v2314_v54  ;;  %v2327_v47 = vsel %vm318_vm1, %v2314_v54, 0 }
 0x471   : > { %2789 = vmatmul.mubr.msk.bf16.vlgmr.msra.gmra.mxu1 %vm314_vm2, %v2647_v24 }
 0x472   : > { %2793 = vmatpush3.bf16.msra.mxu1 %v2115_v52  ;;  %2649 = vmatmul.mubr.msk.bf16.vlgmr.msra.gmra.mxu0 %vm314_vm2, %v2647_v24 }
 0x473   : > { %2132 = vmatpush1.bf16.msra.mxu0 %v2109_v53  ;;  %2794 = vmatprep.mubr.msk.bf16.mxu1 %vm2947_vm0, %v2946_v0 }
 0x474   : > { %2656 = vmatprep.subr.msk.bf16.mxu0 %vm318_vm1, %v2210_v21  ;;  %2798 = vmatprep.subr.bf16.mxu1 %v2946_v0 }
 0x475   : > { %2149 = vmatprep.mubr.bf16.mxu0 %v2948_v1 }
 0x479   : > { %2795 = vmatmul.mubr.msk.bf16.vlgmr.msra.gmra.mxu1 %vm314_vm2, %v2651_v29 }
 0x47a   : > { %2799 = vmatpush3.bf16.msra.mxu1 %v2221_v55  ;;  %2653 = vmatmul.mubr.msk.bf16.vlgmr.msra.gmra.mxu0 %vm314_vm2, %v2651_v29 }
 0x47b   : > { %2238 = vmatpush1.bf16.msra.mxu0 %v2215_v23  ;;  %2800 = vmatprep.mubr.msk.bf16.mxu1 %vm2947_vm0, %v2946_v0 }
 0x47c   : > { %2660 = vmatprep.subr.msk.bf16.mxu0 %vm318_vm1, %v2316_v37  ;;  %2804 = vmatprep.subr.bf16.mxu1 %v2946_v0  ;;  %vm3554_vm1 = vcmask 1043456  }
 0x47d   : > { %2255 = vmatprep.mubr.bf16.mxu0 %v2948_v1  ;;  %vm3557_vm14 = vmmov %vm3554_vm1 }
 0x47e   : > { %vm3558_vm3 = vmmov %vm3554_vm1 }
 0x47f   : > { %vm3561_vm6 = vmmov %vm3554_vm1 }
 0x481   : > { %2801 = vmatmul.mubr.msk.bf16.vlgmr.msra.gmra.mxu1 %vm314_vm2, %v2655_v56 }
 0x482   : > { %2805 = vmatpush3.bf16.msra.mxu1 %v2327_v47  ;;  %2657 = vmatmul.mubr.msk.bf16.vlgmr.msra.gmra.mxu0 %vm314_vm2, %v2655_v56 }
 0x483   : > { %2344 = vmatpush1.bf16.msra.mxu0 %v2321_v59  ;;  %2806 = vmatprep.mubr.msk.bf16.mxu1 %vm2947_vm0, %v2946_v0  ;;  %vm3553_vm0 = vcmask 257024  }
 0x484   : > { %2361 = vmatprep.mubr.bf16.mxu0 %v2948_v1  ;;  %vm3556_vm8 = vmmov %vm3553_vm0 }
 0x485   : > { %vm3559_vm4 = vmmov %vm3553_vm0 }
 0x486   : > { %vm3560_vm5 = vmmov %vm3553_vm0 }
 0x489   : > { %2807 = vmatmul.mubr.msk.bf16.vlgmr.msra.gmra.mxu1 %vm314_vm2, %v2659_v60 }
 0x48a   : > { %2661 = vmatmul.mubr.msk.bf16.vlgmr.msra.gmra.mxu0 %vm314_vm2, %v2659_v60  ;;  %vm3555_vm2 = vmmov %vm3554_vm1 }
 0x509   : > { %v1550_v62 = vpop.f32.mrf.mxu1 }
 0x50a   : > { %v1509_v63 = vpop.f32.mrf.mxu0 }
 0x50b   : > { %v2760_v2 = vpop.f32.mrf.mxu1 }
 0x50c   : > { %v1511_v4 = vpop.f32.mrf.mxu0 }
 0x50d   : > { %v1553_v50 = vpop.f32.mrf.mxu1 }
 0x50e   : > { %v1513_v5 = vpop.f32.mrf.mxu0 }
 0x50f   : > { %v2761_v6 = vpop.f32.mrf.mxu1 }
 0x510   : > { %v1514_v39 = vpop.f32.mrf.mxu0 }
 0x511   : > { %v1643_v7 = vpop.f32.mrf.mxu1 }
 0x512   : > { %v1602_v0 = vpop.f32.mrf.mxu0  ;;  %v1644_v55 = vadd.f32 %v1643_v7, %v1550_v62 }
 0x513   : > { %v2766_v9 = vpop.f32.mrf.mxu1  ;;  %v1603_v31 = vadd.f32 %v1602_v0, %v1509_v63 }
 0x514   : > { %v1604_v1 = vpop.f32.mrf.mxu0 }
 0x515   : > { %v1646_v61 = vpop.f32.mrf.mxu1  ;;  %v1605_v47 = vadd.f32 %v1604_v1, %v1511_v4 }
 0x516   : > { %v1606_v10 = vpop.f32.mrf.mxu0 }
 0x517   : > { %v2767_v11 = vpop.f32.mrf.mxu1 }
 0x518   : > { %v1607_v12 = vpop.f32.mrf.mxu0 }
 0x519   : > { %v1746_v14 = vpop.f32.mrf.mxu1 }
 0x51a   : > { %v1705_v13 = vpop.f32.mrf.mxu0  ;;  %v1754_v56 = vadd.f32 %v1746_v14, %v1644_v55 }
 0x51b   : > { %v2772_v15 = vpop.f32.mrf.mxu1  ;;  %v1752_v59 = vadd.f32 %v1705_v13, %v1603_v31 }
 0x51c   : > { %v1707_v17 = vpop.f32.mrf.mxu0 }
 0x51d   : > { %v1749_v19 = vpop.f32.mrf.mxu1  ;;  %v1753_v5 = vadd.f32 %v1707_v17, %v1605_v47 }
 0x51e   : > { %v1709_v20 = vpop.f32.mrf.mxu0 }
 0x51f   : > { %v2773_v25 = vpop.f32.mrf.mxu1 }
 0x520   : > { %v1710_v26 = vpop.f32.mrf.mxu0 }
 0x521   : > { %v1863_v27 = vpop.f32.mrf.mxu1 }
 0x522   : > { %v1822_v28 = vpop.f32.mrf.mxu0  ;;  %v1871_v2 = vadd.f32 %v1863_v27, %v1754_v56 }
 0x523   : > { %v2778_v3 = vpop.f32.mrf.mxu1  ;;  %v1869_v6 = vadd.f32 %v1822_v28, %v1752_v59  ;;  %v2417_v28 = vpop.permute.xlu1 %2416 }
 0x524   : > { %v1824_v30 = vpop.f32.mrf.mxu0 }
 0x525   : > { %v1866_v8 = vpop.f32.mrf.mxu1  ;;  %v1870_v10 = vadd.f32 %v1824_v30, %v1753_v5 }
 0x526   : > { %v1826_v33 = vpop.f32.mrf.mxu0 }
 0x527   : > { %v2779_v34 = vpop.f32.mrf.mxu1 }
 0x528   : > { %v1827_v35 = vpop.f32.mrf.mxu0 }
 0x529   : > { %v1969_v44 = vpop.f32.mrf.mxu1 }
 0x52a   : > { %v1928_v36 = vpop.f32.mrf.mxu0  ;;  %v1977_v9 = vadd.f32 %v1969_v44, %v1871_v2 }
 0x52b   : > { %v2784_v38 = vpop.f32.mrf.mxu1  ;;  %v1975_v11 = vadd.f32 %v1928_v36, %v1869_v6 }
 0x52c   : > { %v1930_v42 = vpop.f32.mrf.mxu0 }
 0x52d   : > { %v1972_v43 = vpop.f32.mrf.mxu1  ;;  %v1976_v7 = vadd.f32 %v1930_v42, %v1870_v10 }
 0x52e   : > { %v1932_v45 = vpop.f32.mrf.mxu0 }
 0x52f   : > { %v2785_v46 = vpop.f32.mrf.mxu1 }
 0x530   : > { %v1933_v48 = vpop.f32.mrf.mxu0 }
 0x531   : > { %v2075_v18 = vpop.f32.mrf.mxu1 }
 0x532   : > { %v2034_v24 = vpop.f32.mrf.mxu0  ;;  %v2083_v15 = vadd.f32 %v2075_v18, %v1977_v9 }
 0x533   : > { %v2790_v32 = vpop.f32.mrf.mxu1  ;;  %v2081_v63 = vadd.f32 %v2034_v24, %v1975_v11 }
 0x534   : > { %v2036_v49 = vpop.f32.mrf.mxu0 }
 0x535   : > { %v2078_v52 = vpop.f32.mrf.mxu1  ;;  %v2082_v4 = vadd.f32 %v2036_v49, %v1976_v7 }
 0x536   : > { %v2038_v53 = vpop.f32.mrf.mxu0 }
 0x537   : > { %v2791_v41 = vpop.f32.mrf.mxu1 }
 0x538   : > { %v2039_v21 = vpop.f32.mrf.mxu0 }
 0x539   : > { %v2192_v29 = vpop.f32.mrf.mxu1 }
 0x53a   : > { %v2151_v51 = vpop.f32.mrf.mxu0  ;;  %v2200_v14 = vadd.f32 %v2192_v29, %v2083_v15 }
 0x53b   : > { %v2796_v54 = vpop.f32.mrf.mxu1  ;;  %v2198_v1 = vadd.f32 %v2151_v51, %v2081_v63  ;;  %v2458_v63 = vld [vmem:[%s3054_s9 + $0x8] sm:$0xf] }
 0x53c   : > { %v2153_v23 = vpop.f32.mrf.mxu0 }
 0x53d   : > { %v2195_v37 = vpop.f32.mrf.mxu1  ;;  %v2199_v17 = vadd.f32 %v2153_v23, %v2082_v4 }
 0x53e   : > { %v2155_v40 = vpop.f32.mrf.mxu0 }
 0x53f   : > { %v2797_v60 = vpop.f32.mrf.mxu1 }
 0x540   : > { %v2156_v50 = vpop.f32.mrf.mxu0 }
 0x541   : > { %v2298_v39 = vpop.f32.mrf.mxu1 }
 0x542   : > { %v2257_v61 = vpop.f32.mrf.mxu0  ;;  %v2306_v20 = vadd.f32 %v2298_v39, %v2200_v14 }
 0x543   : > { %v2802_v12 = vpop.f32.mrf.mxu1  ;;  %v2304_v26 = vadd.f32 %v2257_v61, %v2198_v1 }
 0x544   : > { %v2259_v62 = vpop.f32.mrf.mxu0 }
 0x545   : > { %v2301_v0 = vpop.f32.mrf.mxu1  ;;  %v2305_v8 = vadd.f32 %v2259_v62, %v2199_v17  ;;  %v2457_v62 = vld [vmem:[%s3054_s9] sm:$0xff] }
 0x546   : > { %v2261_v19 = vpop.f32.mrf.mxu0 }
 0x547   : > { %v2803_v13 = vpop.f32.mrf.mxu1 }
 0x548   : > { %v2262_v25 = vpop.f32.mrf.mxu0 }
 0x549   : > { %v2404_v27 = vpop.f32.mrf.mxu1 }
 0x54a   : > { %v2412_v3 = vadd.f32 %v2404_v27, %v2306_v20  ;;  %v2363_v30 = vpop.f32.mrf.mxu0 }
 0x54b   : > { %v2410_v33 = vadd.f32 %v2363_v30, %v2304_v26  ;;  %v2808_v34 = vpop.f32.mrf.mxu1 }
 0x54c   : > { %v2421_v35 = vadd.f32 %v2417_v28, %v2412_v3  ;;  %v2365_v44 = vpop.f32.mrf.mxu0 }
 0x54d   : > { %v2419_v36 = vadd.f32 %v2417_v28, %v2410_v33  ;;  %v2411_v38 = vadd.f32 %v2365_v44, %v2305_v8  ;;  %v2407_v42 = vpop.f32.mrf.mxu1 }
 0x54e   : > { %v2424_v43 = vmul.f32 %v3271_v58, %v2421_v35  ;;  %v2367_v45 = vpop.f32.mrf.mxu0 }
 0x54f   : > { %v2422_v46 = vmul.f32 %v3280_v16, %v2419_v36  ;;  %v2420_v48 = vadd.f32 %v2417_v28, %v2411_v38  ;;  %v2809_v18 = vpop.f32.mrf.mxu1 }
 0x550   : > { %2430 = vst.msk [vmem:[#allocation2 + $0x8] sm:$0xf] %vm3553_vm0, %v2424_v43  ;;  %v2368_v24 = vpop.f32.mrf.mxu0  ;;  %v2441_v52 = vmul.f32 %v2424_v43, %v2424_v43  ;;  %v2434_v58 = vsel %vm3556_vm8, %v2424_v43, 0.0 }
 0x551   : > { %v2423_v32 = vmul.f32 %v3283_v22, %v2420_v48  ;;  %v2439_v49 = vmul.f32 %v2422_v46, %v2422_v46  ;;  %v2431_v41 = vsel %vm3554_vm1, %v2422_v46, 0.0 }
 0x552   : > { %v2445_v31 = vsel %vm3559_vm4, %v2441_v52, 0.0 }
 0x553   : > { %v2427_v53 = vcombine.low %v2422_v46, %v2423_v32  ;;  %v2432_v21 = vsel %vm3555_vm2, %v2423_v32, 0.0  ;;  %v2440_v29 = vmul.f32 %v2423_v32, %v2423_v32  ;;  %v2442_v16 = vsel %vm3557_vm14, %v2439_v49, 0.0 }
 0x554   : > { %v2433_v51 = vadd.f32 %v2432_v21, %v2431_v41 }
 0x555   : > { %v2443_v54 = vsel %vm3558_vm3, %v2440_v29, 0.0 }
 0x556   : > { %v2435_v55 = vadd.f32 %v2434_v58, %v2433_v51  ;;  %v2444_v23 = vadd.f32 %v2443_v54, %v2442_v16 }
 0x557   : > { %v2460_v39 = vld [vmem:[#allocation2 + $0x8] sm:$0xf] }
 0x558   : > { %2436 = vadd.xlane.f32.xlu0 %v2435_v55  ;;  %v2446_v22 = vadd.f32 %v2445_v31, %v2444_v23 }
 0x55a   : > { %2447 = vadd.xlane.f32.xlu1 %v2446_v22 }
 0x5e1   : > { %v2437_v37 = vpop.xlane.xlu0 %2436 }
 0x5e2   : > { %v2450_v56 = vmul.f32 0.00390625, %v2437_v37 }
 0x5e3   : > { %v2448_v40 = vpop.xlane.xlu1 %2447 }
 0x5e4   : > { %v2452_v47 = vmul.f32 %v2450_v56, %v2450_v56  ;;  %v2451_v59 = vmul.f32 0.00390625, %v2448_v40  ;;  %v2468_v5 = vrot.slane %v2450_v56, %v3294_v57 }
 0x5e6   : > { %v2453_v60 = vsub.f32 %v2451_v59, %v2452_v47  ;;  %v2470_v9 = vsub.f32 %v2427_v53, %v2468_v5  ;;  %v2471_v61 = vsub.f32 %v2460_v39, %v2468_v5 }
 0x5e8   : > { %v2454_v2 = vmax.f32 %v2453_v60, 0.0 }
 0x5ea   : > { %v2455_v50 = vadd.f32 1e-05, %v2454_v2 }
 0x5ec   : > { %2882 = vrsqrt.f32 %v2455_v50 }
 0x5f9   : > { %v2883_v6 = vpop.eup %2882 }
 0x5fa   : > { %v2479_v10 = vrot.slane %v2883_v6, %v3294_v57 }
 0x5fc   : > { %v2482_v11 = vmul.f32 %v2479_v10, %v2471_v61  ;;  %v2481_v12 = vmul.f32 %v2479_v10, %v2470_v9 }
 0x5fe   : > { %2487 = vrot.lane.b32.xlu1 %v2482_v11, %s2961_s26  ;;  %2485 = vrot.lane.b32.xlu0 %v2481_v12, %s2961_s26  ;;  %s217_s26 = scalar_lea.vmem [#allocation4], %s2810_s8 }
 0x5ff   : > { %s2526_s25 = sshll.u32 %s217_s26, 4  ;;  %s2527_s25 = int_to_ptr.vmem [resolvable:$true] %s2526_s25 }
 0x600   : > { %p2891_p0 = scmp.lt.s32.totalorder %s2527_s25, %s2889_s11 }
 0x670   : > { %v2486_v15 = vpop.permute.xlu0 %2485  ;;  %v2488_v0 = vpop.permute.xlu1 %2487 }
 0x671   : > { %v2489_v7 = vrot.slane %v2486_v15, 4 }
 0x673   : > { %v2490_v14 = vsel %vm1409_vm9, %v2489_v7, %v2486_v15  ;;  %v2491_v19 = vsel %vm1409_vm9, %v2489_v7, %v2488_v0  ;;  %vm3562_vm9 = vcmask 891904  }
 0x674   : > { %v2494_v4 = vadd.f32 %v2490_v14, %v2457_v62  ;;  %v2495_v1 = vadd.f32 %v2491_v19, %v2458_v63 }
 0x676   : > { %2500 = vrot.lane.b32.xlu1 %v2495_v1, %s2952_s13  ;;  %2498 = vrot.lane.b32.xlu0 %v2494_v4, %s2952_s13  ;;  %s2884_s13 = scalar_lea.vmem %s2527_s25, 192 }
 0x677   : > { %p2885_p11 = scmp.ne.s32.totalorder %s2527_s25, %s2884_s13  ;;  %p2892_p1 = scmp.lt.s32.totalorder %s2890_s12, %s2884_s13 }
 0x679   : > { %p2886_p12 = pnand %p2885_p11, %p3033_p5  ;;  %p2893_p2 = por %p2892_p1, %p2891_p0 }
 0x67b   : > { %p2887_p13 = pneg %p2886_p12 }
 0x67d   : > { %p2894_p3 = pnand %p2893_p2, %p2887_p13 }
 0x6e8   : > { %v2501_v57 = vpop.permute.xlu1 %2500  ;;  %v2499_v13 = vpop.permute.xlu0 %2498 }
 0x6e9   : > { %v2503_v20 = vrot.slane %v2501_v57, 4  ;;  %2510 = vst.msk [vmem:[%s217_s26 + $0x8] sm:$0xf] %vm3560_vm5, %v2501_v57  ;;  %v2502_v25 = vrot.slane %v2499_v13, 4 }
 0x6eb   : > { %v2504_v17 = vsel %vm3561_vm6, %v2502_v25, %v2503_v20 }
 0x6ec   : > { %v2506_v26 = vsel %vm3562_vm9, %v2499_v13, %v2504_v17 }
 0x6ed   : > { %2509 = vst [vmem:[%s217_s26] sm:$0xff] %v2506_v26 }
 0x6ee   : > { %2897 = shalt.err (!%p2894_p3)
}
 0x6ef   : > { %s2898_s14 = scalar_lea.hbm %s3492_s6, 192  ;;  %s2902_s17 = scalar_lea.hbm %s3533_s5, 384 }
 0x6f0   : > { %p2899_p4 = scmp.ne.s32.totalorder %s3492_s6, %s2898_s14  ;;  %p2903_p9 = scmp.lt.s32.totalorder %s3492_s6, %s3533_s5 }
 0x6f1   : > { %p2904_p10 = scmp.lt.s32.totalorder %s2902_s17, %s2898_s14 }
 0x6f2   : > { %p2900_p7 = pnand %p2899_p4, %p3033_p5 }
 0x6f3   : > { %p2905_p11 = por %p2904_p10, %p2903_p9 }
 0x6f4   : > { %p2901_p8 = pneg %p2900_p7 }
 0x6f6   : > { %p2906_p12 = pnand %p2905_p11, %p2901_p8 }
 0x6f8   : > { %2909 = shalt.err (!%p2906_p12)
}
 0x6f9   : > { %2819 = dma.vmem_to_hbm [thread:$0]  (%p3033_p5), %s2527_s25, 192, %s3492_s6, %s2512_s22  }
 0x6fa PF: > { %p2825_p13 = scmp.ge.s32.totalorder %s2944_s21, 2  ;;  %s2538_s23 = sand.u32 1, %s2932_s18  }
 0x6fb   : > { %s2539_s26 = scalar_lea.sflag [#allocation5], %s2538_s23 }
 0x6fc   : > { %p2822_p0 = pnand %p2825_p13, %p3037_p6 }
 0x6fe   : > { %p2823_p1 = pneg %p2822_p0 }
 0x700   : > { %2927 = dma.done.wait (%p2823_p1), %s2539_s26, 192  }
 0x701   : > { %2929 = vsyncadd (%p2823_p1), %s2539_s26, 4294967104  ;;  %p15_p2 = scmp.ge.s32.totalorder %s3020_s24, 4   ;;  %s3563_s18 = smov %s2936_s19 }
 0x702   : > { %s3564_s19 = smov %s2940_s20  ;;  %s3565_s20 = smov %s3031_s27 }
 0x703   : > { %s3566_s21 = smov %s3020_s24  ;;  %17 = sbr.rel (!%p15_p2) target bundleno = 3 (0x3), region = 91 }
 0x708   :  { %2544 = vsyncpa [#allocation5], 1 }
 0x709   :  { %2546 = vsyncpa [#allocation5 + $0x1], 1 }

</bundles_post_ra>
